<compile_context>
chip_gen: v5e
topology: v5e:2x2
jax: 0.10.0
libtpu: 0.0.40
codegen_flags: <defaults>
</compile_context>

<pallas_src>
import functools
import math

import jax
import jax.numpy as jnp
from jax.experimental import pallas as pl
from jax.experimental.pallas import tpu as pltpu

# ---- model hyper-parameters (small, consistent with the module __init__) ----
NUM_VOCAB = 50
CHANNELS = 32
NUM_LAYERS = 2
NUM_HEADS = 2
HEAD_DIM = CHANNELS // NUM_HEADS
FFN_DIM = 4 * CHANNELS
LN_EPS = 1e-5
SCALE = math.sqrt(CHANNELS)

# rows-per-block target for the flattened (B*T, C) activation layout
ROWS_TARGET = 512

# packed per-layer vector parameters: (L, 8, C), rows 6..7 unused padding
VEC_BO = 0     # attention output-projection bias
VEC_B2 = 1     # FFN second-layer bias
VEC_LN1G = 2
VEC_LN1B = 3
VEC_LN2G = 4
VEC_LN2B = 5
VEC_ROWS = 8


def _layer_norm(x, g, b):
    mean = jnp.mean(x, axis=-1, keepdims=True)
    var = jnp.mean((x - mean) ** 2, axis=-1, keepdims=True)
    return (x - mean) * jax.lax.rsqrt(var + LN_EPS) * g + b


def _softmax(s):
    s = s - jnp.max(s, axis=-1, keepdims=True)
    e = jnp.exp(s)
    denom = jnp.sum(e, axis=-1, keepdims=True)
    return e * pl.reciprocal(denom, approx=True)


def encoder_kernel(lens_ref,                     # scalar-prefetch: (Bp,) int32 in SMEM
                   x_ref,                        # (Mb, C) f32 rows (gb batches * Tp tokens)
                   wqkv_ref, bqkv_ref,           # (L,C,3C) bf16, (L,1,3C) f32
                   wo_ref,                       # (L,H,D,C) bf16
                   vec_ref,                      # (L,8,C) f32 packed small params
                   w1_ref, b1_ref,               # (L,C,F) bf16, (L,1,F) f32
                   w2_ref,                       # (L,F,C) bf16
                   wout_ref, bout_ref,           # (C,C) bf16, (1,C) f32
                   o_ref,                        # (Mb, C) f32
                   *, gb, seq_len):
    Mb = gb * seq_len
    g = pl.program_id(0)
    inv_sqrt_d = jnp.float32(1.0 / math.sqrt(HEAD_DIM))

    # ---- O(gb*T) mask construction from SMEM lengths (no (Mb,Mb) iota/divmod) ----
    kpos = jax.lax.broadcasted_iota(jnp.int32, (gb, 1, seq_len), 2)
    kbid = jax.lax.broadcasted_iota(jnp.int32, (gb, 1, seq_len), 0)
    qpos = jax.lax.broadcasted_iota(jnp.int32, (gb, seq_len, 1), 1)
    qbid = jax.lax.broadcasted_iota(jnp.int32, (gb, seq_len, 1), 0)

    kvalid = jnp.zeros((gb, 1, seq_len), jnp.bool_)
    qvalid = jnp.zeros((gb, seq_len, 1), jnp.bool_)
    for b in range(gb):                           # static unroll, gb is small
        len_b = lens_ref[g * gb + b]              # dynamic scalar SMEM read
        kvalid = kvalid | ((kbid == b) & (kpos < len_b))
        qvalid = qvalid | ((qbid == b) & (qpos < len_b))

    # additive attention bias over keys (broadcasts over heads & query rows)
    attn_bias = jnp.where(kvalid, 0.0, -1e9).astype(jnp.float32)     # (gb,1,T)
    mask = qvalid.reshape(Mb, 1).astype(jnp.float32)                 # (Mb,1)

    # sqrt(C) embedding scale folded into the mask multiply
    x = x_ref[...] * (mask * jnp.float32(SCALE))                     # (Mb, C) f32

    for l in range(NUM_LAYERS):
        vecs = vec_ref[l]                         # (8, C) f32, read once per layer
        x_b = x.astype(jnp.bfloat16)

        # ---- fused QKV projection: one (Mb,C) @ (C,3C) matmul per layer ----
        qkv = jnp.dot(x_b, wqkv_ref[l],
                      preferred_element_type=jnp.float32) + bqkv_ref[l]   # (Mb,3C)

        # ---- per-batch, per-head attention (block-diagonal waste removed) ----
        attn = jnp.zeros((Mb, CHANNELS), jnp.float32)
        for h in range(NUM_HEADS):
            lo = h * HEAD_DIM
            q_h = qkv[:, lo:lo + HEAD_DIM].reshape(gb, seq_len, HEAD_DIM)
            k_h = qkv[:, CHANNELS + lo:CHANNELS + lo + HEAD_DIM].reshape(gb, seq_len, HEAD_DIM)
            v_h = qkv[:, 2 * CHANNELS + lo:2 * CHANNELS + lo + HEAD_DIM].reshape(gb, seq_len, HEAD_DIM)

            s = jnp.einsum('bqd,bkd->bqk',
                           q_h.astype(jnp.bfloat16), k_h.astype(jnp.bfloat16),
                           preferred_element_type=jnp.float32) * inv_sqrt_d
            s = s + attn_bias                                         # (gb,T,T)
            p = _softmax(s)
            ctx = jnp.einsum('bqk,bkd->bqd',
                             p.astype(jnp.bfloat16), v_h.astype(jnp.bfloat16),
                             preferred_element_type=jnp.float32)      # (gb,T,D)
            # sum_h ctx_h @ Wo_h  ==  concat(heads) @ Wo
            attn = attn + jnp.dot(ctx.reshape(Mb, HEAD_DIM).astype(jnp.bfloat16),
                                  wo_ref[l, h],
                                  preferred_element_type=jnp.float32)
        attn = attn + vecs[VEC_BO:VEC_BO + 1, :]

        x = _layer_norm(x + attn,
                        vecs[VEC_LN1G:VEC_LN1G + 1, :],
                        vecs[VEC_LN1B:VEC_LN1B + 1, :])

        # ---- feed-forward ----
        h1 = jnp.dot(x.astype(jnp.bfloat16), w1_ref[l],
                     preferred_element_type=jnp.float32) + b1_ref[l]
        h1 = jax.nn.relu(h1)
        ffn = jnp.dot(h1.astype(jnp.bfloat16), w2_ref[l],
                      preferred_element_type=jnp.float32) + vecs[VEC_B2:VEC_B2 + 1, :]

        x = _layer_norm(x + ffn,
                        vecs[VEC_LN2G:VEC_LN2G + 1, :],
                        vecs[VEC_LN2B:VEC_LN2B + 1, :])
        x = x * mask

    # encoder tail: x = x * mask; x = out_layer(x) * mask
    x = x * mask
    y = (jnp.dot(x.astype(jnp.bfloat16), wout_ref[...],
                 preferred_element_type=jnp.float32) + bout_ref[...]) * mask
    o_ref[...] = y


def init_params(key):
    ks = jax.random.split(key, 8)
    L, C, H, D, F = NUM_LAYERS, CHANNELS, NUM_HEADS, HEAD_DIM, FFN_DIM

    def w(k, shape, fan_in):
        return jax.random.normal(k, shape, jnp.float32) * (1.0 / math.sqrt(fan_in))

    p = {}
    # embedding ~ N(0, channels^-0.5) as in the module __init__
    p["emb"] = jax.random.normal(ks[0], (NUM_VOCAB, C), jnp.float32) * (C ** -0.5)
    # fused QKV: columns [Q(h0..hH) | K(h0..hH) | V(h0..hH)], heads contiguous
    p["w_qkv"] = w(ks[1], (L, C, 3 * C), C)
    p["b_qkv"] = jnp.zeros((L, 1, 3 * C), jnp.float32)
    p["w_o"] = w(ks[2], (L, H, D, C), C)          # per-head slices of the (C,C) out proj
    vec = jnp.zeros((L, VEC_ROWS, C), jnp.float32)
    vec = vec.at[:, VEC_LN1G].set(1.0).at[:, VEC_LN2G].set(1.0)
    p["vec"] = vec                                # bo, b2, ln1g/b, ln2g/b packed (+pad)
    p["w1"] = w(ks[3], (L, C, F), C)
    p["b1"] = jnp.zeros((L, 1, F), jnp.float32)
    p["w2"] = w(ks[4], (L, F, C), F)
    p["w_out"] = w(ks[5], (C, C), C)
    p["b_out"] = jnp.zeros((1, C), jnp.float32)
    return p


def transformer_text_encoder(x_ids, x_lengths, params):
    B, T = x_ids.shape
    C = CHANNELS

    # ---- glue (plain JAX): embedding gather, pad T to a multiple of 8, flatten ----
    x_emb = params["emb"][x_ids]                                   # (B, T, C) f32 (scale applied in-kernel)
    Tp = ((T + 7) // 8) * 8
    if Tp != T:
        x_emb = jnp.pad(x_emb, ((0, 0), (0, Tp - T), (0, 0)))      # padded positions masked by length

    # rows-per-block: pack several batches per grid step, but guarantee >= 2
    # grid steps whenever B >= 2 so the "parallel" axis spans both v7x TCs.
    gb = max(1, min(B, ROWS_TARGET // Tp))
    if B >= 2:
        gb = min(gb, -(-B // 2))
    Bp = -(-B // gb) * gb
    grid = Bp // gb
    Mb = gb * Tp

    lens = x_lengths.astype(jnp.int32)
    if Bp != B:
        x_emb = jnp.pad(x_emb, ((0, Bp - B), (0, 0), (0, 0)))
        lens = jnp.pad(lens, (0, Bp - B))                          # padded batches -> length 0 -> zeroed
    x_flat = x_emb.reshape(Bp * Tp, C)

    # bf16 weights for the MXU; biases / LN params stay f32.
    w_qkv = params["w_qkv"].astype(jnp.bfloat16)
    w_o = params["w_o"].astype(jnp.bfloat16)
    w1 = params["w1"].astype(jnp.bfloat16)
    w2 = params["w2"].astype(jnp.bfloat16)
    w_out = params["w_out"].astype(jnp.bfloat16)

    def full_spec(shape):
        zeros = (0,) * len(shape)
        return pl.BlockSpec(shape, lambda g, lens_ref, z=zeros: z)

    in_specs = [
        pl.BlockSpec((Mb, C), lambda g, lens_ref: (g, 0)),         # x rows
        full_spec(w_qkv.shape),
        full_spec(params["b_qkv"].shape),
        full_spec(w_o.shape),
        full_spec(params["vec"].shape),
        full_spec(w1.shape),
        full_spec(params["b1"].shape),
        full_spec(w2.shape),
        full_spec(w_out.shape),
        full_spec(params["b_out"].shape),
    ]
    out_specs = pl.BlockSpec((Mb, C), lambda g, lens_ref: (g, 0))

    kernel = functools.partial(encoder_kernel, gb=gb, seq_len=Tp)

    y = pl.pallas_call(
        kernel,
        out_shape=jax.ShapeDtypeStruct((Bp * Tp, C), jnp.float32),
        grid_spec=pltpu.PrefetchScalarGridSpec(
            num_scalar_prefetch=1,
            grid=(grid,),
            in_specs=in_specs,
            out_specs=out_specs,
        ),
        compiler_params=pltpu.CompilerParams(
            dimension_semantics=("parallel",),
            vmem_limit_bytes=32 * 1024 * 1024,
        ),
    )(
        lens, x_flat,
        w_qkv, params["b_qkv"], w_o, params["vec"],
        w1, params["b1"], w2, w_out, params["b_out"],
    )

    y = y.reshape(Bp, Tp, C)[:B, :T]
    # match the PyTorch return: (x.transpose(1, 2), mask.transpose(1, 2))
    x_out = jnp.transpose(y, (0, 2, 1))                                   # (B, C, T)
    mask_out = (jnp.arange(T)[None, None, :] < x_lengths[:, None, None]).astype(jnp.float32)  # (B,1,T)
    return x_out, mask_out


if __name__ == "__main__":
    key = jax.random.PRNGKey(0)
    pkey, dkey = jax.random.split(key)
    params = init_params(pkey)

    B, T = 2, 8
    x_ids = jax.random.randint(dkey, (B, T), 0, NUM_VOCAB, dtype=jnp.int32)
    x_lengths = jnp.array([8, 5], dtype=jnp.int32)

    x_out, mask_out = transformer_text_encoder(x_ids, x_lengths, params)
    jax.block_until_ready((x_out, mask_out))
    assert x_out.shape == (B, CHANNELS, T) and mask_out.shape == (B, 1, T)
    assert bool(jnp.all(jnp.isfinite(x_out)))
    # padded positions must be zero
    assert bool(jnp.all(x_out[1, :, 5:] == 0.0))
    print("KERNEL_OK")
</pallas_src>

<mosaic_0001>
module attributes {stable_mosaic.version = 11 : i64} {
  func.func @encoder_kernel(%arg0: i32, %arg1: memref<2xi32, #tpu.memory_space<smem>>, %arg2: memref<8x32xf32, #tpu.memory_space<vmem>>, %arg3: memref<2x32x96xbf16, #tpu.memory_space<vmem>>, %arg4: memref<2x1x96xf32, #tpu.memory_space<vmem>>, %arg5: memref<2x2x16x32xbf16, #tpu.memory_space<vmem>>, %arg6: memref<2x8x32xf32, #tpu.memory_space<vmem>>, %arg7: memref<2x32x128xbf16, #tpu.memory_space<vmem>>, %arg8: memref<2x1x128xf32, #tpu.memory_space<vmem>>, %arg9: memref<2x128x32xbf16, #tpu.memory_space<vmem>>, %arg10: memref<32x32xbf16, #tpu.memory_space<vmem>>, %arg11: memref<1x32xf32, #tpu.memory_space<vmem>>, %arg12: memref<8x32xf32, #tpu.memory_space<vmem>>) attributes {dimension_semantics = [#tpu.dimension_semantics<parallel>], iteration_bounds = array<i64: 2>, scalar_prefetch = 1 : i64, scratch_operands = 0 : i64, tpu.core_type = #tpu.core_type<tc>, window_params = [{transform_indices = @transform_0, window_bounds = array<i64: 8, 32>}, {pipeline_mode = #tpu.pipeline_mode<synchronous>, transform_indices = @transform_1, window_bounds = array<i64: 2, 32, 96>}, {pipeline_mode = #tpu.pipeline_mode<synchronous>, transform_indices = @transform_2, window_bounds = array<i64: 2, 1, 96>}, {pipeline_mode = #tpu.pipeline_mode<synchronous>, transform_indices = @transform_3, window_bounds = array<i64: 2, 2, 16, 32>}, {pipeline_mode = #tpu.pipeline_mode<synchronous>, transform_indices = @transform_4, window_bounds = array<i64: 2, 8, 32>}, {pipeline_mode = #tpu.pipeline_mode<synchronous>, transform_indices = @transform_5, window_bounds = array<i64: 2, 32, 128>}, {pipeline_mode = #tpu.pipeline_mode<synchronous>, transform_indices = @transform_6, window_bounds = array<i64: 2, 1, 128>}, {pipeline_mode = #tpu.pipeline_mode<synchronous>, transform_indices = @transform_7, window_bounds = array<i64: 2, 128, 32>}, {pipeline_mode = #tpu.pipeline_mode<synchronous>, transform_indices = @transform_8, window_bounds = array<i64: 32, 32>}, {pipeline_mode = #tpu.pipeline_mode<synchronous>, transform_indices = @transform_9, window_bounds = array<i64: 1, 32>}, {transform_indices = @transform_10, window_bounds = array<i64: 8, 32>}]} {
    %0 = tpu.iota {dimensions = array<i32: 2>} : vector<1x1x8xi32>
    %1 = tpu.iota {dimensions = array<i32: 0>} : vector<1x1x8xi32>
    %2 = tpu.iota {dimensions = array<i32: 1>} : vector<1x8x1xi32>
    %3 = tpu.iota {dimensions = array<i32: 0>} : vector<1x8x1xi32>
    %false = arith.constant false
    %4 = vector.broadcast %false : i1 to vector<1x1x8xi1>
    %false_0 = arith.constant false
    %5 = vector.broadcast %false_0 : i1 to vector<1x8x1xi1>
    %c1_i32 = arith.constant 1 : i32
    %6 = arith.muli %arg0, %c1_i32 : i32
    %c0_i32 = arith.constant 0 : i32
    %7 = arith.addi %6, %c0_i32 : i32
    %8 = arith.index_cast %7 : i32 to index
    %9 = memref.load %arg1[%8] : memref<2xi32, #tpu.memory_space<smem>>
    %c0_i32_1 = arith.constant 0 : i32
    %10 = vector.broadcast %c0_i32_1 : i32 to vector<1x1x8xi32>
    %11 = arith.cmpi eq, %1, %10 : vector<1x1x8xi32>
    %12 = vector.broadcast %9 : i32 to vector<1x1x8xi32>
    %13 = arith.cmpi slt, %0, %12 : vector<1x1x8xi32>
    %14 = arith.andi %11, %13 : vector<1x1x8xi1>
    %15 = arith.ori %4, %14 : vector<1x1x8xi1>
    %c0_i32_2 = arith.constant 0 : i32
    %16 = vector.broadcast %c0_i32_2 : i32 to vector<1x8x1xi32>
    %17 = arith.cmpi eq, %3, %16 : vector<1x8x1xi32>
    %18 = vector.broadcast %9 : i32 to vector<1x8x1xi32>
    %19 = arith.cmpi slt, %2, %18 : vector<1x8x1xi32>
    %20 = arith.andi %17, %19 : vector<1x8x1xi1>
    %21 = arith.ori %5, %20 : vector<1x8x1xi1>
    %cst = arith.constant 0.000000e+00 : f32
    %cst_3 = arith.constant -1.000000e+09 : f32
    %22 = vector.broadcast %cst : f32 to vector<1x1x8xf32>
    %23 = vector.broadcast %cst_3 : f32 to vector<1x1x8xf32>
    %24 = arith.select %15, %22, %23 : vector<1x1x8xi1>, vector<1x1x8xf32>
    %25 = vector.shape_cast %21 : vector<1x8x1xi1> to vector<8x1xi1>
    %26 = arith.extui %25 : vector<8x1xi1> to vector<8x1xi32>
    %27 = arith.sitofp %26 : vector<8x1xi32> to vector<8x1xf32>
    %c0 = arith.constant 0 : index
    %c0_4 = arith.constant 0 : index
    %28 = vector.load %arg2[%c0, %c0_4] : memref<8x32xf32, #tpu.memory_space<vmem>>, vector<8x32xf32>
    %cst_5 = arith.constant 5.65685415 : f32
    %29 = vector.broadcast %cst_5 : f32 to vector<8x1xf32>
    %30 = arith.mulf %27, %29 : vector<8x1xf32>
    %31 = vector.broadcast %30 : vector<8x1xf32> to vector<8x32xf32>
    %32 = arith.mulf %28, %31 : vector<8x32xf32>
    %c0_6 = arith.constant 0 : index
    %c0_7 = arith.constant 0 : index
    %c0_8 = arith.constant 0 : index
    %33 = vector.load %arg6[%c0_6, %c0_7, %c0_8] : memref<2x8x32xf32, #tpu.memory_space<vmem>>, vector<1x8x32xf32>
    %34 = vector.shape_cast %33 : vector<1x8x32xf32> to vector<8x32xf32>
    %35 = arith.truncf %32 : vector<8x32xf32> to vector<8x32xbf16>
    %c0_9 = arith.constant 0 : index
    %c0_10 = arith.constant 0 : index
    %c0_11 = arith.constant 0 : index
    %36 = vector.load %arg3[%c0_9, %c0_10, %c0_11] : memref<2x32x96xbf16, #tpu.memory_space<vmem>>, vector<1x32x96xbf16>
    %37 = vector.shape_cast %36 : vector<1x32x96xbf16> to vector<32x96xbf16>
    %cst_12 = arith.constant dense<0.000000e+00> : vector<8x96xf32>
    %38 = tpu.matmul %35, %37, %cst_12 {dimension_numbers = #tpu.dot_dimension_numbers<[1], [0], [0], [1], [0, 0, 1, 1], [], []>} : vector<8x32xbf16>, vector<32x96xbf16>, vector<8x96xf32> -> vector<8x96xf32>
    %c0_13 = arith.constant 0 : index
    %c0_14 = arith.constant 0 : index
    %c0_15 = arith.constant 0 : index
    %39 = vector.load %arg4[%c0_13, %c0_14, %c0_15] : memref<2x1x96xf32, #tpu.memory_space<vmem>>, vector<1x1x96xf32>
    %40 = vector.shape_cast %39 : vector<1x1x96xf32> to vector<1x96xf32>
    %41 = vector.broadcast %40 : vector<1x96xf32> to vector<8x96xf32>
    %42 = arith.addf %38, %41 : vector<8x96xf32>
    %cst_16 = arith.constant 0.000000e+00 : f32
    %43 = vector.broadcast %cst_16 : f32 to vector<8x32xf32>
    %44 = vector.extract_strided_slice %42 {offsets = [0, 0], sizes = [8, 16], strides = [1, 1]} : vector<8x96xf32> to vector<8x16xf32>
    %45 = vector.shape_cast %44 : vector<8x16xf32> to vector<1x8x16xf32>
    %46 = vector.extract_strided_slice %42 {offsets = [0, 32], sizes = [8, 16], strides = [1, 1]} : vector<8x96xf32> to vector<8x16xf32>
    %47 = vector.shape_cast %46 : vector<8x16xf32> to vector<1x8x16xf32>
    %48 = vector.extract_strided_slice %42 {offsets = [0, 64], sizes = [8, 16], strides = [1, 1]} : vector<8x96xf32> to vector<8x16xf32>
    %49 = vector.shape_cast %48 : vector<8x16xf32> to vector<1x8x16xf32>
    %50 = arith.truncf %45 : vector<1x8x16xf32> to vector<1x8x16xbf16>
    %51 = arith.truncf %47 : vector<1x8x16xf32> to vector<1x8x16xbf16>
    "tpu.trace_start"() <{level = 10 : i32, message = "bqd,bkd->bqk"}> : () -> ()
    %cst_17 = arith.constant dense<0.000000e+00> : vector<1x8x8xf32>
    %52 = tpu.matmul %50, %51, %cst_17 {dimension_numbers = #tpu.dot_dimension_numbers<[2], [2], [1], [1], [0, 0, 0, 1, 1, 1], [0], [0]>} : vector<1x8x16xbf16>, vector<1x8x16xbf16>, vector<1x8x8xf32> -> vector<1x8x8xf32>
    "tpu.trace_stop"() : () -> ()
    %cst_18 = arith.constant 2.500000e-01 : f32
    %53 = vector.broadcast %cst_18 : f32 to vector<1x8x8xf32>
    %54 = arith.mulf %52, %53 : vector<1x8x8xf32>
    %55 = vector.broadcast %24 : vector<1x1x8xf32> to vector<1x8x8xf32>
    %56 = arith.addf %54, %55 : vector<1x8x8xf32>
    %cst_19 = arith.constant dense<0xFF800000> : vector<1x8xf32>
    %57 = vector.multi_reduction <maximumf>, %56, %cst_19 [2] : vector<1x8x8xf32> to vector<1x8xf32>
    %58 = vector.shape_cast %57 : vector<1x8xf32> to vector<1x8x1xf32>
    %59 = vector.broadcast %58 : vector<1x8x1xf32> to vector<1x8x8xf32>
    %60 = arith.subf %56, %59 : vector<1x8x8xf32>
    %61 = math.exp %60 : vector<1x8x8xf32>
    %cst_20 = arith.constant dense<0.000000e+00> : vector<1x8xf32>
    %62 = vector.multi_reduction <add>, %61, %cst_20 [2] : vector<1x8x8xf32> to vector<1x8xf32>
    %63 = vector.shape_cast %62 : vector<1x8xf32> to vector<1x8x1xf32>
    %64 = tpu.reciprocal %63 {approx = true} : vector<1x8x1xf32> -> vector<1x8x1xf32>
    %65 = vector.broadcast %64 : vector<1x8x1xf32> to vector<1x8x8xf32>
    %66 = arith.mulf %61, %65 : vector<1x8x8xf32>
    %67 = arith.truncf %66 : vector<1x8x8xf32> to vector<1x8x8xbf16>
    %68 = arith.truncf %49 : vector<1x8x16xf32> to vector<1x8x16xbf16>
    "tpu.trace_start"() <{level = 10 : i32, message = "bqk,bkd->bqd"}> : () -> ()
    %cst_21 = arith.constant dense<0.000000e+00> : vector<1x8x16xf32>
    %69 = tpu.matmul %67, %68, %cst_21 {dimension_numbers = #tpu.dot_dimension_numbers<[2], [1], [1], [2], [0, 0, 0, 1, 1, 2], [0], [0]>} : vector<1x8x8xbf16>, vector<1x8x16xbf16>, vector<1x8x16xf32> -> vector<1x8x16xf32>
    "tpu.trace_stop"() : () -> ()
    %70 = vector.shape_cast %69 : vector<1x8x16xf32> to vector<8x16xf32>
    %71 = arith.truncf %70 : vector<8x16xf32> to vector<8x16xbf16>
    %c0_22 = arith.constant 0 : index
    %c0_23 = arith.constant 0 : index
    %c0_24 = arith.constant 0 : index
    %c0_25 = arith.constant 0 : index
    %72 = vector.load %arg5[%c0_22, %c0_23, %c0_24, %c0_25] : memref<2x2x16x32xbf16, #tpu.memory_space<vmem>>, vector<1x1x16x32xbf16>
    %73 = vector.shape_cast %72 : vector<1x1x16x32xbf16> to vector<16x32xbf16>
    %cst_26 = arith.constant dense<0.000000e+00> : vector<8x32xf32>
    %74 = tpu.matmul %71, %73, %cst_26 {dimension_numbers = #tpu.dot_dimension_numbers<[1], [0], [0], [1], [0, 0, 1, 1], [], []>} : vector<8x16xbf16>, vector<16x32xbf16>, vector<8x32xf32> -> vector<8x32xf32>
    %75 = arith.addf %43, %74 : vector<8x32xf32>
    %76 = vector.extract_strided_slice %42 {offsets = [0, 16], sizes = [8, 16], strides = [1, 1]} : vector<8x96xf32> to vector<8x16xf32>
    %77 = vector.shape_cast %76 : vector<8x16xf32> to vector<1x8x16xf32>
    %78 = vector.extract_strided_slice %42 {offsets = [0, 48], sizes = [8, 16], strides = [1, 1]} : vector<8x96xf32> to vector<8x16xf32>
    %79 = vector.shape_cast %78 : vector<8x16xf32> to vector<1x8x16xf32>
    %80 = vector.extract_strided_slice %42 {offsets = [0, 80], sizes = [8, 16], strides = [1, 1]} : vector<8x96xf32> to vector<8x16xf32>
    %81 = vector.shape_cast %80 : vector<8x16xf32> to vector<1x8x16xf32>
    %82 = arith.truncf %77 : vector<1x8x16xf32> to vector<1x8x16xbf16>
    %83 = arith.truncf %79 : vector<1x8x16xf32> to vector<1x8x16xbf16>
    "tpu.trace_start"() <{level = 10 : i32, message = "bqd,bkd->bqk"}> : () -> ()
    %cst_27 = arith.constant dense<0.000000e+00> : vector<1x8x8xf32>
    %84 = tpu.matmul %82, %83, %cst_27 {dimension_numbers = #tpu.dot_dimension_numbers<[2], [2], [1], [1], [0, 0, 0, 1, 1, 1], [0], [0]>} : vector<1x8x16xbf16>, vector<1x8x16xbf16>, vector<1x8x8xf32> -> vector<1x8x8xf32>
    "tpu.trace_stop"() : () -> ()
    %cst_28 = arith.constant 2.500000e-01 : f32
    %85 = vector.broadcast %cst_28 : f32 to vector<1x8x8xf32>
    %86 = arith.mulf %84, %85 : vector<1x8x8xf32>
    %87 = vector.broadcast %24 : vector<1x1x8xf32> to vector<1x8x8xf32>
    %88 = arith.addf %86, %87 : vector<1x8x8xf32>
    %cst_29 = arith.constant dense<0xFF800000> : vector<1x8xf32>
    %89 = vector.multi_reduction <maximumf>, %88, %cst_29 [2] : vector<1x8x8xf32> to vector<1x8xf32>
    %90 = vector.shape_cast %89 : vector<1x8xf32> to vector<1x8x1xf32>
    %91 = vector.broadcast %90 : vector<1x8x1xf32> to vector<1x8x8xf32>
    %92 = arith.subf %88, %91 : vector<1x8x8xf32>
    %93 = math.exp %92 : vector<1x8x8xf32>
    %cst_30 = arith.constant dense<0.000000e+00> : vector<1x8xf32>
    %94 = vector.multi_reduction <add>, %93, %cst_30 [2] : vector<1x8x8xf32> to vector<1x8xf32>
    %95 = vector.shape_cast %94 : vector<1x8xf32> to vector<1x8x1xf32>
    %96 = tpu.reciprocal %95 {approx = true} : vector<1x8x1xf32> -> vector<1x8x1xf32>
    %97 = vector.broadcast %96 : vector<1x8x1xf32> to vector<1x8x8xf32>
    %98 = arith.mulf %93, %97 : vector<1x8x8xf32>
    %99 = arith.truncf %98 : vector<1x8x8xf32> to vector<1x8x8xbf16>
    %100 = arith.truncf %81 : vector<1x8x16xf32> to vector<1x8x16xbf16>
    "tpu.trace_start"() <{level = 10 : i32, message = "bqk,bkd->bqd"}> : () -> ()
    %cst_31 = arith.constant dense<0.000000e+00> : vector<1x8x16xf32>
    %101 = tpu.matmul %99, %100, %cst_31 {dimension_numbers = #tpu.dot_dimension_numbers<[2], [1], [1], [2], [0, 0, 0, 1, 1, 2], [0], [0]>} : vector<1x8x8xbf16>, vector<1x8x16xbf16>, vector<1x8x16xf32> -> vector<1x8x16xf32>
    "tpu.trace_stop"() : () -> ()
    %102 = vector.shape_cast %101 : vector<1x8x16xf32> to vector<8x16xf32>
    %103 = arith.truncf %102 : vector<8x16xf32> to vector<8x16xbf16>
    %c0_32 = arith.constant 0 : index
    %c1 = arith.constant 1 : index
    %c0_33 = arith.constant 0 : index
    %c0_34 = arith.constant 0 : index
    %104 = vector.load %arg5[%c0_32, %c1, %c0_33, %c0_34] : memref<2x2x16x32xbf16, #tpu.memory_space<vmem>>, vector<1x1x16x32xbf16>
    %105 = vector.shape_cast %104 : vector<1x1x16x32xbf16> to vector<16x32xbf16>
    %cst_35 = arith.constant dense<0.000000e+00> : vector<8x32xf32>
    %106 = tpu.matmul %103, %105, %cst_35 {dimension_numbers = #tpu.dot_dimension_numbers<[1], [0], [0], [1], [0, 0, 1, 1], [], []>} : vector<8x16xbf16>, vector<16x32xbf16>, vector<8x32xf32> -> vector<8x32xf32>
    %107 = arith.addf %75, %106 : vector<8x32xf32>
    %108 = vector.extract_strided_slice %34 {offsets = [0, 0], sizes = [1, 32], strides = [1, 1]} : vector<8x32xf32> to vector<1x32xf32>
    %109 = vector.broadcast %108 : vector<1x32xf32> to vector<8x32xf32>
    %110 = arith.addf %107, %109 : vector<8x32xf32>
    %111 = arith.addf %32, %110 : vector<8x32xf32>
    %112 = vector.extract_strided_slice %34 {offsets = [2, 0], sizes = [1, 32], strides = [1, 1]} : vector<8x32xf32> to vector<1x32xf32>
    %113 = vector.extract_strided_slice %34 {offsets = [3, 0], sizes = [1, 32], strides = [1, 1]} : vector<8x32xf32> to vector<1x32xf32>
    %cst_36 = arith.constant dense<0.000000e+00> : vector<8xf32>
    %114 = vector.multi_reduction <add>, %111, %cst_36 [1] : vector<8x32xf32> to vector<8xf32>
    %115 = vector.shape_cast %114 : vector<8xf32> to vector<8x1xf32>
    %cst_37 = arith.constant 3.200000e+01 : f32
    %116 = vector.broadcast %cst_37 : f32 to vector<8x1xf32>
    %117 = arith.divf %115, %116 : vector<8x1xf32>
    %118 = vector.broadcast %117 : vector<8x1xf32> to vector<8x32xf32>
    %119 = arith.subf %111, %118 : vector<8x32xf32>
    %120 = arith.mulf %119, %119 : vector<8x32xf32>
    %cst_38 = arith.constant dense<0.000000e+00> : vector<8xf32>
    %121 = vector.multi_reduction <add>, %120, %cst_38 [1] : vector<8x32xf32> to vector<8xf32>
    %122 = vector.shape_cast %121 : vector<8xf32> to vector<8x1xf32>
    %cst_39 = arith.constant 3.200000e+01 : f32
    %123 = vector.broadcast %cst_39 : f32 to vector<8x1xf32>
    %124 = arith.divf %122, %123 : vector<8x1xf32>
    %125 = vector.broadcast %117 : vector<8x1xf32> to vector<8x32xf32>
    %126 = arith.subf %111, %125 : vector<8x32xf32>
    %cst_40 = arith.constant 9.99999974E-6 : f32
    %127 = vector.broadcast %cst_40 : f32 to vector<8x1xf32>
    %128 = arith.addf %124, %127 : vector<8x1xf32>
    %129 = math.rsqrt %128 : vector<8x1xf32>
    %130 = vector.broadcast %129 : vector<8x1xf32> to vector<8x32xf32>
    %131 = arith.mulf %126, %130 : vector<8x32xf32>
    %132 = vector.broadcast %112 : vector<1x32xf32> to vector<8x32xf32>
    %133 = arith.mulf %131, %132 : vector<8x32xf32>
    %134 = vector.broadcast %113 : vector<1x32xf32> to vector<8x32xf32>
    %135 = arith.addf %133, %134 : vector<8x32xf32>
    %136 = arith.truncf %135 : vector<8x32xf32> to vector<8x32xbf16>
    %c0_41 = arith.constant 0 : index
    %c0_42 = arith.constant 0 : index
    %c0_43 = arith.constant 0 : index
    %137 = vector.load %arg7[%c0_41, %c0_42, %c0_43] : memref<2x32x128xbf16, #tpu.memory_space<vmem>>, vector<1x32x128xbf16>
    %138 = vector.shape_cast %137 : vector<1x32x128xbf16> to vector<32x128xbf16>
    %cst_44 = arith.constant dense<0.000000e+00> : vector<8x128xf32>
    %139 = tpu.matmul %136, %138, %cst_44 {dimension_numbers = #tpu.dot_dimension_numbers<[1], [0], [0], [1], [0, 0, 1, 1], [], []>} : vector<8x32xbf16>, vector<32x128xbf16>, vector<8x128xf32> -> vector<8x128xf32>
    %c0_45 = arith.constant 0 : index
    %c0_46 = arith.constant 0 : index
    %c0_47 = arith.constant 0 : index
    %140 = vector.load %arg8[%c0_45, %c0_46, %c0_47] : memref<2x1x128xf32, #tpu.memory_space<vmem>>, vector<1x1x128xf32>
    %141 = vector.shape_cast %140 : vector<1x1x128xf32> to vector<1x128xf32>
    %142 = vector.broadcast %141 : vector<1x128xf32> to vector<8x128xf32>
    %143 = arith.addf %139, %142 : vector<8x128xf32>
    %cst_48 = arith.constant 0.000000e+00 : f32
    %144 = vector.broadcast %cst_48 : f32 to vector<8x128xf32>
    %145 = arith.maximumf %143, %144 : vector<8x128xf32>
    %146 = arith.truncf %145 : vector<8x128xf32> to vector<8x128xbf16>
    %c0_49 = arith.constant 0 : index
    %c0_50 = arith.constant 0 : index
    %c0_51 = arith.constant 0 : index
    %147 = vector.load %arg9[%c0_49, %c0_50, %c0_51] : memref<2x128x32xbf16, #tpu.memory_space<vmem>>, vector<1x128x32xbf16>
    %148 = vector.shape_cast %147 : vector<1x128x32xbf16> to vector<128x32xbf16>
    %cst_52 = arith.constant dense<0.000000e+00> : vector<8x32xf32>
    %149 = tpu.matmul %146, %148, %cst_52 {dimension_numbers = #tpu.dot_dimension_numbers<[1], [0], [0], [1], [0, 0, 1, 1], [], []>} : vector<8x128xbf16>, vector<128x32xbf16>, vector<8x32xf32> -> vector<8x32xf32>
    %150 = vector.extract_strided_slice %34 {offsets = [1, 0], sizes = [1, 32], strides = [1, 1]} : vector<8x32xf32> to vector<1x32xf32>
    %151 = vector.broadcast %150 : vector<1x32xf32> to vector<8x32xf32>
    %152 = arith.addf %149, %151 : vector<8x32xf32>
    %153 = arith.addf %135, %152 : vector<8x32xf32>
    %154 = vector.extract_strided_slice %34 {offsets = [4, 0], sizes = [1, 32], strides = [1, 1]} : vector<8x32xf32> to vector<1x32xf32>
    %155 = vector.extract_strided_slice %34 {offsets = [5, 0], sizes = [1, 32], strides = [1, 1]} : vector<8x32xf32> to vector<1x32xf32>
    %cst_53 = arith.constant dense<0.000000e+00> : vector<8xf32>
    %156 = vector.multi_reduction <add>, %153, %cst_53 [1] : vector<8x32xf32> to vector<8xf32>
    %157 = vector.shape_cast %156 : vector<8xf32> to vector<8x1xf32>
    %cst_54 = arith.constant 3.200000e+01 : f32
    %158 = vector.broadcast %cst_54 : f32 to vector<8x1xf32>
    %159 = arith.divf %157, %158 : vector<8x1xf32>
    %160 = vector.broadcast %159 : vector<8x1xf32> to vector<8x32xf32>
    %161 = arith.subf %153, %160 : vector<8x32xf32>
    %162 = arith.mulf %161, %161 : vector<8x32xf32>
    %cst_55 = arith.constant dense<0.000000e+00> : vector<8xf32>
    %163 = vector.multi_reduction <add>, %162, %cst_55 [1] : vector<8x32xf32> to vector<8xf32>
    %164 = vector.shape_cast %163 : vector<8xf32> to vector<8x1xf32>
    %cst_56 = arith.constant 3.200000e+01 : f32
    %165 = vector.broadcast %cst_56 : f32 to vector<8x1xf32>
    %166 = arith.divf %164, %165 : vector<8x1xf32>
    %167 = vector.broadcast %159 : vector<8x1xf32> to vector<8x32xf32>
    %168 = arith.subf %153, %167 : vector<8x32xf32>
    %cst_57 = arith.constant 9.99999974E-6 : f32
    %169 = vector.broadcast %cst_57 : f32 to vector<8x1xf32>
    %170 = arith.addf %166, %169 : vector<8x1xf32>
    %171 = math.rsqrt %170 : vector<8x1xf32>
    %172 = vector.broadcast %171 : vector<8x1xf32> to vector<8x32xf32>
    %173 = arith.mulf %168, %172 : vector<8x32xf32>
    %174 = vector.broadcast %154 : vector<1x32xf32> to vector<8x32xf32>
    %175 = arith.mulf %173, %174 : vector<8x32xf32>
    %176 = vector.broadcast %155 : vector<1x32xf32> to vector<8x32xf32>
    %177 = arith.addf %175, %176 : vector<8x32xf32>
    %178 = vector.broadcast %27 : vector<8x1xf32> to vector<8x32xf32>
    %179 = arith.mulf %177, %178 : vector<8x32xf32>
    %c1_58 = arith.constant 1 : index
    %c0_59 = arith.constant 0 : index
    %c0_60 = arith.constant 0 : index
    %180 = vector.load %arg6[%c1_58, %c0_59, %c0_60] : memref<2x8x32xf32, #tpu.memory_space<vmem>>, vector<1x8x32xf32>
    %181 = vector.shape_cast %180 : vector<1x8x32xf32> to vector<8x32xf32>
    %182 = arith.truncf %179 : vector<8x32xf32> to vector<8x32xbf16>
    %c1_61 = arith.constant 1 : index
    %c0_62 = arith.constant 0 : index
    %c0_63 = arith.constant 0 : index
    %183 = vector.load %arg3[%c1_61, %c0_62, %c0_63] : memref<2x32x96xbf16, #tpu.memory_space<vmem>>, vector<1x32x96xbf16>
    %184 = vector.shape_cast %183 : vector<1x32x96xbf16> to vector<32x96xbf16>
    %cst_64 = arith.constant dense<0.000000e+00> : vector<8x96xf32>
    %185 = tpu.matmul %182, %184, %cst_64 {dimension_numbers = #tpu.dot_dimension_numbers<[1], [0], [0], [1], [0, 0, 1, 1], [], []>} : vector<8x32xbf16>, vector<32x96xbf16>, vector<8x96xf32> -> vector<8x96xf32>
    %c1_65 = arith.constant 1 : index
    %c0_66 = arith.constant 0 : index
    %c0_67 = arith.constant 0 : index
    %186 = vector.load %arg4[%c1_65, %c0_66, %c0_67] : memref<2x1x96xf32, #tpu.memory_space<vmem>>, vector<1x1x96xf32>
    %187 = vector.shape_cast %186 : vector<1x1x96xf32> to vector<1x96xf32>
    %188 = vector.broadcast %187 : vector<1x96xf32> to vector<8x96xf32>
    %189 = arith.addf %185, %188 : vector<8x96xf32>
    %cst_68 = arith.constant 0.000000e+00 : f32
    %190 = vector.broadcast %cst_68 : f32 to vector<8x32xf32>
    %191 = vector.extract_strided_slice %189 {offsets = [0, 0], sizes = [8, 16], strides = [1, 1]} : vector<8x96xf32> to vector<8x16xf32>
    %192 = vector.shape_cast %191 : vector<8x16xf32> to vector<1x8x16xf32>
    %193 = vector.extract_strided_slice %189 {offsets = [0, 32], sizes = [8, 16], strides = [1, 1]} : vector<8x96xf32> to vector<8x16xf32>
    %194 = vector.shape_cast %193 : vector<8x16xf32> to vector<1x8x16xf32>
    %195 = vector.extract_strided_slice %189 {offsets = [0, 64], sizes = [8, 16], strides = [1, 1]} : vector<8x96xf32> to vector<8x16xf32>
    %196 = vector.shape_cast %195 : vector<8x16xf32> to vector<1x8x16xf32>
    %197 = arith.truncf %192 : vector<1x8x16xf32> to vector<1x8x16xbf16>
    %198 = arith.truncf %194 : vector<1x8x16xf32> to vector<1x8x16xbf16>
    "tpu.trace_start"() <{level = 10 : i32, message = "bqd,bkd->bqk"}> : () -> ()
    %cst_69 = arith.constant dense<0.000000e+00> : vector<1x8x8xf32>
    %199 = tpu.matmul %197, %198, %cst_69 {dimension_numbers = #tpu.dot_dimension_numbers<[2], [2], [1], [1], [0, 0, 0, 1, 1, 1], [0], [0]>} : vector<1x8x16xbf16>, vector<1x8x16xbf16>, vector<1x8x8xf32> -> vector<1x8x8xf32>
    "tpu.trace_stop"() : () -> ()
    %cst_70 = arith.constant 2.500000e-01 : f32
    %200 = vector.broadcast %cst_70 : f32 to vector<1x8x8xf32>
    %201 = arith.mulf %199, %200 : vector<1x8x8xf32>
    %202 = vector.broadcast %24 : vector<1x1x8xf32> to vector<1x8x8xf32>
    %203 = arith.addf %201, %202 : vector<1x8x8xf32>
    %cst_71 = arith.constant dense<0xFF800000> : vector<1x8xf32>
    %204 = vector.multi_reduction <maximumf>, %203, %cst_71 [2] : vector<1x8x8xf32> to vector<1x8xf32>
    %205 = vector.shape_cast %204 : vector<1x8xf32> to vector<1x8x1xf32>
    %206 = vector.broadcast %205 : vector<1x8x1xf32> to vector<1x8x8xf32>
    %207 = arith.subf %203, %206 : vector<1x8x8xf32>
    %208 = math.exp %207 : vector<1x8x8xf32>
    %cst_72 = arith.constant dense<0.000000e+00> : vector<1x8xf32>
    %209 = vector.multi_reduction <add>, %208, %cst_72 [2] : vector<1x8x8xf32> to vector<1x8xf32>
    %210 = vector.shape_cast %209 : vector<1x8xf32> to vector<1x8x1xf32>
    %211 = tpu.reciprocal %210 {approx = true} : vector<1x8x1xf32> -> vector<1x8x1xf32>
    %212 = vector.broadcast %211 : vector<1x8x1xf32> to vector<1x8x8xf32>
    %213 = arith.mulf %208, %212 : vector<1x8x8xf32>
    %214 = arith.truncf %213 : vector<1x8x8xf32> to vector<1x8x8xbf16>
    %215 = arith.truncf %196 : vector<1x8x16xf32> to vector<1x8x16xbf16>
    "tpu.trace_start"() <{level = 10 : i32, message = "bqk,bkd->bqd"}> : () -> ()
    %cst_73 = arith.constant dense<0.000000e+00> : vector<1x8x16xf32>
    %216 = tpu.matmul %214, %215, %cst_73 {dimension_numbers = #tpu.dot_dimension_numbers<[2], [1], [1], [2], [0, 0, 0, 1, 1, 2], [0], [0]>} : vector<1x8x8xbf16>, vector<1x8x16xbf16>, vector<1x8x16xf32> -> vector<1x8x16xf32>
    "tpu.trace_stop"() : () -> ()
    %217 = vector.shape_cast %216 : vector<1x8x16xf32> to vector<8x16xf32>
    %218 = arith.truncf %217 : vector<8x16xf32> to vector<8x16xbf16>
    %c1_74 = arith.constant 1 : index
    %c0_75 = arith.constant 0 : index
    %c0_76 = arith.constant 0 : index
    %c0_77 = arith.constant 0 : index
    %219 = vector.load %arg5[%c1_74, %c0_75, %c0_76, %c0_77] : memref<2x2x16x32xbf16, #tpu.memory_space<vmem>>, vector<1x1x16x32xbf16>
    %220 = vector.shape_cast %219 : vector<1x1x16x32xbf16> to vector<16x32xbf16>
    %cst_78 = arith.constant dense<0.000000e+00> : vector<8x32xf32>
    %221 = tpu.matmul %218, %220, %cst_78 {dimension_numbers = #tpu.dot_dimension_numbers<[1], [0], [0], [1], [0, 0, 1, 1], [], []>} : vector<8x16xbf16>, vector<16x32xbf16>, vector<8x32xf32> -> vector<8x32xf32>
    %222 = arith.addf %190, %221 : vector<8x32xf32>
    %223 = vector.extract_strided_slice %189 {offsets = [0, 16], sizes = [8, 16], strides = [1, 1]} : vector<8x96xf32> to vector<8x16xf32>
    %224 = vector.shape_cast %223 : vector<8x16xf32> to vector<1x8x16xf32>
    %225 = vector.extract_strided_slice %189 {offsets = [0, 48], sizes = [8, 16], strides = [1, 1]} : vector<8x96xf32> to vector<8x16xf32>
    %226 = vector.shape_cast %225 : vector<8x16xf32> to vector<1x8x16xf32>
    %227 = vector.extract_strided_slice %189 {offsets = [0, 80], sizes = [8, 16], strides = [1, 1]} : vector<8x96xf32> to vector<8x16xf32>
    %228 = vector.shape_cast %227 : vector<8x16xf32> to vector<1x8x16xf32>
    %229 = arith.truncf %224 : vector<1x8x16xf32> to vector<1x8x16xbf16>
    %230 = arith.truncf %226 : vector<1x8x16xf32> to vector<1x8x16xbf16>
    "tpu.trace_start"() <{level = 10 : i32, message = "bqd,bkd->bqk"}> : () -> ()
    %cst_79 = arith.constant dense<0.000000e+00> : vector<1x8x8xf32>
    %231 = tpu.matmul %229, %230, %cst_79 {dimension_numbers = #tpu.dot_dimension_numbers<[2], [2], [1], [1], [0, 0, 0, 1, 1, 1], [0], [0]>} : vector<1x8x16xbf16>, vector<1x8x16xbf16>, vector<1x8x8xf32> -> vector<1x8x8xf32>
    "tpu.trace_stop"() : () -> ()
    %cst_80 = arith.constant 2.500000e-01 : f32
    %232 = vector.broadcast %cst_80 : f32 to vector<1x8x8xf32>
    %233 = arith.mulf %231, %232 : vector<1x8x8xf32>
    %234 = vector.broadcast %24 : vector<1x1x8xf32> to vector<1x8x8xf32>
    %235 = arith.addf %233, %234 : vector<1x8x8xf32>
    %cst_81 = arith.constant dense<0xFF800000> : vector<1x8xf32>
    %236 = vector.multi_reduction <maximumf>, %235, %cst_81 [2] : vector<1x8x8xf32> to vector<1x8xf32>
    %237 = vector.shape_cast %236 : vector<1x8xf32> to vector<1x8x1xf32>
    %238 = vector.broadcast %237 : vector<1x8x1xf32> to vector<1x8x8xf32>
    %239 = arith.subf %235, %238 : vector<1x8x8xf32>
    %240 = math.exp %239 : vector<1x8x8xf32>
    %cst_82 = arith.constant dense<0.000000e+00> : vector<1x8xf32>
    %241 = vector.multi_reduction <add>, %240, %cst_82 [2] : vector<1x8x8xf32> to vector<1x8xf32>
    %242 = vector.shape_cast %241 : vector<1x8xf32> to vector<1x8x1xf32>
    %243 = tpu.reciprocal %242 {approx = true} : vector<1x8x1xf32> -> vector<1x8x1xf32>
    %244 = vector.broadcast %243 : vector<1x8x1xf32> to vector<1x8x8xf32>
    %245 = arith.mulf %240, %244 : vector<1x8x8xf32>
    %246 = arith.truncf %245 : vector<1x8x8xf32> to vector<1x8x8xbf16>
    %247 = arith.truncf %228 : vector<1x8x16xf32> to vector<1x8x16xbf16>
    "tpu.trace_start"() <{level = 10 : i32, message = "bqk,bkd->bqd"}> : () -> ()
    %cst_83 = arith.constant dense<0.000000e+00> : vector<1x8x16xf32>
    %248 = tpu.matmul %246, %247, %cst_83 {dimension_numbers = #tpu.dot_dimension_numbers<[2], [1], [1], [2], [0, 0, 0, 1, 1, 2], [0], [0]>} : vector<1x8x8xbf16>, vector<1x8x16xbf16>, vector<1x8x16xf32> -> vector<1x8x16xf32>
    "tpu.trace_stop"() : () -> ()
    %249 = vector.shape_cast %248 : vector<1x8x16xf32> to vector<8x16xf32>
    %250 = arith.truncf %249 : vector<8x16xf32> to vector<8x16xbf16>
    %c1_84 = arith.constant 1 : index
    %c1_85 = arith.constant 1 : index
    %c0_86 = arith.constant 0 : index
    %c0_87 = arith.constant 0 : index
    %251 = vector.load %arg5[%c1_84, %c1_85, %c0_86, %c0_87] : memref<2x2x16x32xbf16, #tpu.memory_space<vmem>>, vector<1x1x16x32xbf16>
    %252 = vector.shape_cast %251 : vector<1x1x16x32xbf16> to vector<16x32xbf16>
    %cst_88 = arith.constant dense<0.000000e+00> : vector<8x32xf32>
    %253 = tpu.matmul %250, %252, %cst_88 {dimension_numbers = #tpu.dot_dimension_numbers<[1], [0], [0], [1], [0, 0, 1, 1], [], []>} : vector<8x16xbf16>, vector<16x32xbf16>, vector<8x32xf32> -> vector<8x32xf32>
    %254 = arith.addf %222, %253 : vector<8x32xf32>
    %255 = vector.extract_strided_slice %181 {offsets = [0, 0], sizes = [1, 32], strides = [1, 1]} : vector<8x32xf32> to vector<1x32xf32>
    %256 = vector.broadcast %255 : vector<1x32xf32> to vector<8x32xf32>
    %257 = arith.addf %254, %256 : vector<8x32xf32>
    %258 = arith.addf %179, %257 : vector<8x32xf32>
    %259 = vector.extract_strided_slice %181 {offsets = [2, 0], sizes = [1, 32], strides = [1, 1]} : vector<8x32xf32> to vector<1x32xf32>
    %260 = vector.extract_strided_slice %181 {offsets = [3, 0], sizes = [1, 32], strides = [1, 1]} : vector<8x32xf32> to vector<1x32xf32>
    %cst_89 = arith.constant dense<0.000000e+00> : vector<8xf32>
    %261 = vector.multi_reduction <add>, %258, %cst_89 [1] : vector<8x32xf32> to vector<8xf32>
    %262 = vector.shape_cast %261 : vector<8xf32> to vector<8x1xf32>
    %cst_90 = arith.constant 3.200000e+01 : f32
    %263 = vector.broadcast %cst_90 : f32 to vector<8x1xf32>
    %264 = arith.divf %262, %263 : vector<8x1xf32>
    %265 = vector.broadcast %264 : vector<8x1xf32> to vector<8x32xf32>
    %266 = arith.subf %258, %265 : vector<8x32xf32>
    %267 = arith.mulf %266, %266 : vector<8x32xf32>
    %cst_91 = arith.constant dense<0.000000e+00> : vector<8xf32>
    %268 = vector.multi_reduction <add>, %267, %cst_91 [1] : vector<8x32xf32> to vector<8xf32>
    %269 = vector.shape_cast %268 : vector<8xf32> to vector<8x1xf32>
    %cst_92 = arith.constant 3.200000e+01 : f32
    %270 = vector.broadcast %cst_92 : f32 to vector<8x1xf32>
    %271 = arith.divf %269, %270 : vector<8x1xf32>
    %272 = vector.broadcast %264 : vector<8x1xf32> to vector<8x32xf32>
    %273 = arith.subf %258, %272 : vector<8x32xf32>
    %cst_93 = arith.constant 9.99999974E-6 : f32
    %274 = vector.broadcast %cst_93 : f32 to vector<8x1xf32>
    %275 = arith.addf %271, %274 : vector<8x1xf32>
    %276 = math.rsqrt %275 : vector<8x1xf32>
    %277 = vector.broadcast %276 : vector<8x1xf32> to vector<8x32xf32>
    %278 = arith.mulf %273, %277 : vector<8x32xf32>
    %279 = vector.broadcast %259 : vector<1x32xf32> to vector<8x32xf32>
    %280 = arith.mulf %278, %279 : vector<8x32xf32>
    %281 = vector.broadcast %260 : vector<1x32xf32> to vector<8x32xf32>
    %282 = arith.addf %280, %281 : vector<8x32xf32>
    %283 = arith.truncf %282 : vector<8x32xf32> to vector<8x32xbf16>
    %c1_94 = arith.constant 1 : index
    %c0_95 = arith.constant 0 : index
    %c0_96 = arith.constant 0 : index
    %284 = vector.load %arg7[%c1_94, %c0_95, %c0_96] : memref<2x32x128xbf16, #tpu.memory_space<vmem>>, vector<1x32x128xbf16>
    %285 = vector.shape_cast %284 : vector<1x32x128xbf16> to vector<32x128xbf16>
    %cst_97 = arith.constant dense<0.000000e+00> : vector<8x128xf32>
    %286 = tpu.matmul %283, %285, %cst_97 {dimension_numbers = #tpu.dot_dimension_numbers<[1], [0], [0], [1], [0, 0, 1, 1], [], []>} : vector<8x32xbf16>, vector<32x128xbf16>, vector<8x128xf32> -> vector<8x128xf32>
    %c1_98 = arith.constant 1 : index
    %c0_99 = arith.constant 0 : index
    %c0_100 = arith.constant 0 : index
    %287 = vector.load %arg8[%c1_98, %c0_99, %c0_100] : memref<2x1x128xf32, #tpu.memory_space<vmem>>, vector<1x1x128xf32>
    %288 = vector.shape_cast %287 : vector<1x1x128xf32> to vector<1x128xf32>
    %289 = vector.broadcast %288 : vector<1x128xf32> to vector<8x128xf32>
    %290 = arith.addf %286, %289 : vector<8x128xf32>
    %cst_101 = arith.constant 0.000000e+00 : f32
    %291 = vector.broadcast %cst_101 : f32 to vector<8x128xf32>
    %292 = arith.maximumf %290, %291 : vector<8x128xf32>
    %293 = arith.truncf %292 : vector<8x128xf32> to vector<8x128xbf16>
    %c1_102 = arith.constant 1 : index
    %c0_103 = arith.constant 0 : index
    %c0_104 = arith.constant 0 : index
    %294 = vector.load %arg9[%c1_102, %c0_103, %c0_104] : memref<2x128x32xbf16, #tpu.memory_space<vmem>>, vector<1x128x32xbf16>
    %295 = vector.shape_cast %294 : vector<1x128x32xbf16> to vector<128x32xbf16>
    %cst_105 = arith.constant dense<0.000000e+00> : vector<8x32xf32>
    %296 = tpu.matmul %293, %295, %cst_105 {dimension_numbers = #tpu.dot_dimension_numbers<[1], [0], [0], [1], [0, 0, 1, 1], [], []>} : vector<8x128xbf16>, vector<128x32xbf16>, vector<8x32xf32> -> vector<8x32xf32>
    %297 = vector.extract_strided_slice %181 {offsets = [1, 0], sizes = [1, 32], strides = [1, 1]} : vector<8x32xf32> to vector<1x32xf32>
    %298 = vector.broadcast %297 : vector<1x32xf32> to vector<8x32xf32>
    %299 = arith.addf %296, %298 : vector<8x32xf32>
    %300 = arith.addf %282, %299 : vector<8x32xf32>
    %301 = vector.extract_strided_slice %181 {offsets = [4, 0], sizes = [1, 32], strides = [1, 1]} : vector<8x32xf32> to vector<1x32xf32>
    %302 = vector.extract_strided_slice %181 {offsets = [5, 0], sizes = [1, 32], strides = [1, 1]} : vector<8x32xf32> to vector<1x32xf32>
    %cst_106 = arith.constant dense<0.000000e+00> : vector<8xf32>
    %303 = vector.multi_reduction <add>, %300, %cst_106 [1] : vector<8x32xf32> to vector<8xf32>
    %304 = vector.shape_cast %303 : vector<8xf32> to vector<8x1xf32>
    %cst_107 = arith.constant 3.200000e+01 : f32
    %305 = vector.broadcast %cst_107 : f32 to vector<8x1xf32>
    %306 = arith.divf %304, %305 : vector<8x1xf32>
    %307 = vector.broadcast %306 : vector<8x1xf32> to vector<8x32xf32>
    %308 = arith.subf %300, %307 : vector<8x32xf32>
    %309 = arith.mulf %308, %308 : vector<8x32xf32>
    %cst_108 = arith.constant dense<0.000000e+00> : vector<8xf32>
    %310 = vector.multi_reduction <add>, %309, %cst_108 [1] : vector<8x32xf32> to vector<8xf32>
    %311 = vector.shape_cast %310 : vector<8xf32> to vector<8x1xf32>
    %cst_109 = arith.constant 3.200000e+01 : f32
    %312 = vector.broadcast %cst_109 : f32 to vector<8x1xf32>
    %313 = arith.divf %311, %312 : vector<8x1xf32>
    %314 = vector.broadcast %306 : vector<8x1xf32> to vector<8x32xf32>
    %315 = arith.subf %300, %314 : vector<8x32xf32>
    %cst_110 = arith.constant 9.99999974E-6 : f32
    %316 = vector.broadcast %cst_110 : f32 to vector<8x1xf32>
    %317 = arith.addf %313, %316 : vector<8x1xf32>
    %318 = math.rsqrt %317 : vector<8x1xf32>
    %319 = vector.broadcast %318 : vector<8x1xf32> to vector<8x32xf32>
    %320 = arith.mulf %315, %319 : vector<8x32xf32>
    %321 = vector.broadcast %301 : vector<1x32xf32> to vector<8x32xf32>
    %322 = arith.mulf %320, %321 : vector<8x32xf32>
    %323 = vector.broadcast %302 : vector<1x32xf32> to vector<8x32xf32>
    %324 = arith.addf %322, %323 : vector<8x32xf32>
    %325 = vector.broadcast %27 : vector<8x1xf32> to vector<8x32xf32>
    %326 = arith.mulf %324, %325 : vector<8x32xf32>
    %327 = vector.broadcast %27 : vector<8x1xf32> to vector<8x32xf32>
    %328 = arith.mulf %326, %327 : vector<8x32xf32>
    %329 = arith.truncf %328 : vector<8x32xf32> to vector<8x32xbf16>
    %c0_111 = arith.constant 0 : index
    %c0_112 = arith.constant 0 : index
    %330 = vector.load %arg10[%c0_111, %c0_112] : memref<32x32xbf16, #tpu.memory_space<vmem>>, vector<32x32xbf16>
    %cst_113 = arith.constant dense<0.000000e+00> : vector<8x32xf32>
    %331 = tpu.matmul %329, %330, %cst_113 {dimension_numbers = #tpu.dot_dimension_numbers<[1], [0], [0], [1], [0, 0, 1, 1], [], []>} : vector<8x32xbf16>, vector<32x32xbf16>, vector<8x32xf32> -> vector<8x32xf32>
    %c0_114 = arith.constant 0 : index
    %c0_115 = arith.constant 0 : index
    %332 = vector.load %arg11[%c0_114, %c0_115] : memref<1x32xf32, #tpu.memory_space<vmem>>, vector<1x32xf32>
    %333 = vector.broadcast %332 : vector<1x32xf32> to vector<8x32xf32>
    %334 = arith.addf %331, %333 : vector<8x32xf32>
    %335 = vector.broadcast %27 : vector<8x1xf32> to vector<8x32xf32>
    %336 = arith.mulf %334, %335 : vector<8x32xf32>
    %c0_116 = arith.constant 0 : index
    %c0_117 = arith.constant 0 : index
    %337 = vector.load %arg12[%c0_116, %c0_117] : memref<8x32xf32, #tpu.memory_space<vmem>>, vector<8x32xf32>
    tpu.vector_store %arg12[%c0_116, %c0_117], %336 {strides = array<i32>} : memref<8x32xf32, #tpu.memory_space<vmem>>, vector<8x32xf32>,
    return
  }
  func.func @transform_0(%arg0: i32, %arg1: memref<2xi32, #tpu.memory_space<smem>>) -> (i32, i32) {
    %c0_i32 = arith.constant 0 : i32
    %c0_i32_0 = arith.constant 0 : i32
    return %arg0, %c0_i32 : i32, i32
  }
  func.func @transform_1(%arg0: i32, %arg1: memref<2xi32, #tpu.memory_space<smem>>) -> (i32, i32, i32) {
    %c0_i32 = arith.constant 0 : i32
    %c0_i32_0 = arith.constant 0 : i32
    %c0_i32_1 = arith.constant 0 : i32
    %c0_i32_2 = arith.constant 0 : i32
    return %c0_i32, %c0_i32_0, %c0_i32_1 : i32, i32, i32
  }
  func.func @transform_2(%arg0: i32, %arg1: memref<2xi32, #tpu.memory_space<smem>>) -> (i32, i32, i32) {
    %c0_i32 = arith.constant 0 : i32
    %c0_i32_0 = arith.constant 0 : i32
    %c0_i32_1 = arith.constant 0 : i32
    %c0_i32_2 = arith.constant 0 : i32
    return %c0_i32, %c0_i32_0, %c0_i32_1 : i32, i32, i32
  }
  func.func @transform_3(%arg0: i32, %arg1: memref<2xi32, #tpu.memory_space<smem>>) -> (i32, i32, i32, i32) {
    %c0_i32 = arith.constant 0 : i32
    %c0_i32_0 = arith.constant 0 : i32
    %c0_i32_1 = arith.constant 0 : i32
    %c0_i32_2 = arith.constant 0 : i32
    %c0_i32_3 = arith.constant 0 : i32
    return %c0_i32, %c0_i32_0, %c0_i32_1, %c0_i32_2 : i32, i32, i32, i32
  }
  func.func @transform_4(%arg0: i32, %arg1: memref<2xi32, #tpu.memory_space<smem>>) -> (i32, i32, i32) {
    %c0_i32 = arith.constant 0 : i32
    %c0_i32_0 = arith.constant 0 : i32
    %c0_i32_1 = arith.constant 0 : i32
    %c0_i32_2 = arith.constant 0 : i32
    return %c0_i32, %c0_i32_0, %c0_i32_1 : i32, i32, i32
  }
  func.func @transform_5(%arg0: i32, %arg1: memref<2xi32, #tpu.memory_space<smem>>) -> (i32, i32, i32) {
    %c0_i32 = arith.constant 0 : i32
    %c0_i32_0 = arith.constant 0 : i32
    %c0_i32_1 = arith.constant 0 : i32
    %c0_i32_2 = arith.constant 0 : i32
    return %c0_i32, %c0_i32_0, %c0_i32_1 : i32, i32, i32
  }
  func.func @transform_6(%arg0: i32, %arg1: memref<2xi32, #tpu.memory_space<smem>>) -> (i32, i32, i32) {
    %c0_i32 = arith.constant 0 : i32
    %c0_i32_0 = arith.constant 0 : i32
    %c0_i32_1 = arith.constant 0 : i32
    %c0_i32_2 = arith.constant 0 : i32
    return %c0_i32, %c0_i32_0, %c0_i32_1 : i32, i32, i32
  }
  func.func @transform_7(%arg0: i32, %arg1: memref<2xi32, #tpu.memory_space<smem>>) -> (i32, i32, i32) {
    %c0_i32 = arith.constant 0 : i32
    %c0_i32_0 = arith.constant 0 : i32
    %c0_i32_1 = arith.constant 0 : i32
    %c0_i32_2 = arith.constant 0 : i32
    return %c0_i32, %c0_i32_0, %c0_i32_1 : i32, i32, i32
  }
  func.func @transform_8(%arg0: i32, %arg1: memref<2xi32, #tpu.memory_space<smem>>) -> (i32, i32) {
    %c0_i32 = arith.constant 0 : i32
    %c0_i32_0 = arith.constant 0 : i32
    %c0_i32_1 = arith.constant 0 : i32
    return %c0_i32, %c0_i32_0 : i32, i32
  }
  func.func @transform_9(%arg0: i32, %arg1: memref<2xi32, #tpu.memory_space<smem>>) -> (i32, i32) {
    %c0_i32 = arith.constant 0 : i32
    %c0_i32_0 = arith.constant 0 : i32
    %c0_i32_1 = arith.constant 0 : i32
    return %c0_i32, %c0_i32_0 : i32, i32
  }
  func.func @transform_10(%arg0: i32, %arg1: memref<2xi32, #tpu.memory_space<smem>>) -> (i32, i32) {
    %c0_i32 = arith.constant 0 : i32
    %c0_i32_0 = arith.constant 0 : i32
    return %arg0, %c0_i32 : i32, i32
  }
}

</mosaic_0001>

<bundles_post_ra>
// kernel: tpu_custom_call.1
= control target key start
LH: loop header
LB: loop body
LE: loop exit
PB: predicated region body
PF: predicated region fallthrough
CT: control target
= control target key end

     0   :  { %s1644_s20 = smov [#allocation3]   ;;  %s2017_s0 = inlined_call_operand.vmem [shape: s32[2], index: 0, kind: input, shape index: {}]   ;;  %s2018_s1 = inlined_call_operand.vmem [shape: f32[16,32], index: 1, kind: input, shape index: {}]   ;;  %s2019_s2 = inlined_call_operand.vmem [shape: bf16[2,32,96], index: 2, kind: input, shape index: {}]   ;;  %s2020_s3 = inlined_call_operand.vmem [shape: f32[2,1,96], index: 3, kind: input, shape index: {}]   ;;  %s2021_s4 = inlined_call_operand.vmem [shape: bf16[2,2,16,32], index: 4, kind: input, shape index: {}]   ;;  %s2022_s5 = inlined_call_operand.vmem [shape: f32[2,8,32], index: 5, kind: input, shape index: {}]   ;;  %s2023_s6 = inlined_call_operand.vmem [shape: bf16[2,32,128], index: 6, kind: input, shape index: {}]   ;;  %s2024_s7 = inlined_call_operand.vmem [shape: f32[2,1,128], index: 7, kind: input, shape index: {}]   ;;  %s2025_s8 = inlined_call_operand.vmem [shape: bf16[2,128,32], index: 8, kind: input, shape index: {}]   ;;  %s2026_s9 = inlined_call_operand.vmem [shape: bf16[32,32], index: 9, kind: input, shape index: {}]   ;;  %s2027_s10 = inlined_call_operand.vmem [shape: f32[1,32], index: 10, kind: input, shape index: {}]   ;;  %s2028_s11 = inlined_call_operand.hbm [shape: f32[16,32], index: 11, kind: output, shape index: {}]  }
   0x1   :  { %2031 = sst [smem:[#allocation8_spill]] %s2018_s1  ;;  %s17_s19 = sshll.u32 %s2017_s0, 4  ;;  %s18_s19 = int_to_ptr.vmem [resolvable:$true] %s17_s19 }
   0x2   :  { %20 = dma.vmem_to_smem %s18_s19, 16, %s1644_s20, [#allocation2] }
   0x3   :  { %1622 = dma.done.wait [#allocation2], 16 }
   0x4   :  { %1623 = vsyncadd [#allocation2], 4294967280 }
   0x5   :  { %23 = sfence }
   0x6   :  { %24 = vsyncpa [#allocation5], 0 }
   0x7   :  { %26 = vsyncpa [#allocation5 + $0x1], 0  ;;  %s1716_s21 = smov 0   ;;  %s1718_s22 = smov 0  }
   0x8   :  { %s1720_s23 = smov 0   ;;  %s1722_s24 = smov 0  }
   0x9 LB: > { %s1737_s0 = sadd.s32 4294967295, %s1642_s24   ;;  %s1276_s25 = sadd.s32 4294967294, %s1642_s24   ;;  %s1642_s24 = sphi %s1722_s24, %s2040_s24   ;;  %s1638_s23 = sphi %s1720_s23, %s2039_s23   ;;  %s1634_s22 = sphi %s1718_s22, %s2038_s22   ;;  %s1630_s21 = sphi %s1716_s21, %s2037_s21  }
   0xa   : > { %s1741_s26 = sadd.s32 1, %s1642_s24   ;;  %s254_s27 = sadd.s32 1, %s1638_s23 }
   0xb   : > { %s251_s28 = ssub.s32 %s1642_s24, %s1741_s26  ;;  %p264_p0 = scmp.ne.s32.totalorder %s1638_s23, %s1634_s22 }
   0xc   : > { %p252_p1 = scmp.eq.s32.totalorder %s251_s28, 0  ;;  %p265_p2 = scmp.eq.s32.totalorder %s1737_s0, 1 }
   0xd   : > { %p270_p3 = scmp.ne.s32.totalorder %s1634_s22, %s1630_s21  ;;  %p271_p4 = scmp.eq.s32.totalorder %s1276_s25, 1 }
   0xe   : > { %s1752_s29 = scalar_select %p252_p1, %s1638_s23, %s254_s27  }
   0xf   : > { %p1754_p5 = por %p265_p2, %p264_p0  ;;  %p1758_p6 = por %p271_p4, %p270_p3 }
  0x10   : > { %p1279_p7 = scmp.ge.s32.totalorder %s1642_s24, 1  ;;  %p323_p8 = scmp.lt.s32.totalorder %s1642_s24, 3 }
  0x12   : > { %p324_p9 = pnand %p1279_p7, %p323_p8 }
  0x13   : > { %p360_p10 = scmp.lt.s32.totalorder (!%p324_p9), %s1737_s0, 1  ;;  %s1769_s15 = sld [smem:[#allocation3 + %s1737_s0]] (!%p324_p9) }
  0x14   : > { %327 = sbr.rel (%p324_p9) target bundleno = 3645 (0xe3d), region = 60  ;;  %s2034_s1 = sld [smem:[#allocation8_spill]] (!%p324_p9) }
  0x15   : > { %s1646_s14 = smov (!%p324_p9), 112   ;;  %s1648_s16 = smov (!%p324_p9), 80  }
  0x16   : > { %s2030_s17 = smov (!%p324_p9), 64   ;;  %s1454_s28 = sshll.u32 (!%p324_p9), %s1737_s0, 3 }
  0x17   : > { %s1212_s20 = scalar_lea.hbm (!%p324_p9), %s2028_s11, %s1454_s28 }
  0x19   : > { %v1458_v0 = vld [vmem:[%s2019_s2 + $0x8] sm:$0xff]  ;;  %v365_v1 = vlaneseq  ;;  %v1457_v2 = vld [vmem:[%s2019_s2] sm:$0xff]  ;;  %s361_s18 = scalar_select %p360_p10, %s1737_s0, 1  ;;  %v370_v4 = vstv %s1769_s15  ;;  %v1645_v5 = vmov 0.0   ;;  %vm403_vm1 = vcmask 261120  }
  0x1a   : > { %413 = vmatpush.bf16.msra.mxu0 %v1458_v0  ;;  %v1535_v11 = vld [vmem:[%s2020_s3] ss:$0 sm:$0xff]  ;;  %s1647_s15 = smov 96   ;;  %vm426_vm2 = vcmask 130048   ;;  %vm466_vm3 = vcmask 1043456   ;;  %vm448_vm5 = vcmask 64512  }
  0x1b   : > { %v368_v3 = vshrl.u32 %v365_v1, 7  ;;  %s1281_s19 = sshll.u32 %s361_s18, 3  ;;  %s2029_s18 = smov 48   ;;  %v366_v27 = vand.u32 127, %v365_v1  ;;  %v1651_v29 = vmov -1e+09  }
  0x1c   : > { %s363_s27 = scalar_lea.vmem %s2034_s1, %s1281_s19  ;;  %v1459_v58 = vld [vmem:[%s2021_s4] sm:$0xff]  ;;  %v1460_v59 = vld [vmem:[%s2021_s4 + $0x8] sm:$0xff] }
  0x1d   : > { %vm373_vm0 = vcmp.lt.s32.totalorder %v368_v3, %v370_v4  ;;  %v378_v7 = vld [vmem:[%s363_s27] sm:$0xff]  ;;  %vm371_vm4 = vcmp.lt.s32.totalorder %v366_v27, %v370_v4  ;;  %v1470_v27 = vld [vmem:[%s2025_s8 + $0x38] sm:$0xff] }
  0x1e   : > { %414 = vmatpush.bf16.msra.mxu0 %v1457_v2  ;;  %v1779_v6 = vsel %vm373_vm0, 1.0, %v1645_v5  ;;  %v1801_v30 = vsel %vm371_vm4, 0.0, %v1651_v29  ;;  %v1822_v3 = vld [vmem:[%s2022_s5] sm:$0xff] }
  0x1f   : > { %v379_v8 = vmul.f32 5.656854, %v1779_v6  ;;  %v592_v5 = vperm.slane %v1822_v3, 0 }
  0x21   : > { %v1782_v9 = vmul.f32 %v379_v8, %v378_v7 }
  0x22   : > { %564 = vmatpush.bf16.msrb.mxu0 %v1460_v59 }
  0x23   : > { %v382_v10 = vpack.c.bf16 %v1782_v9, %v1782_v9 }
  0x25   : > { %1291 = vmatmul.msk.bf16.vlgmr.msra.gmra.mxu0 %vm403_vm1, %v382_v10 }
  0xa2   : > { %v416_v12 = vpop.f32.mrf.mxu0 }
  0xa3   : > { %v417_v13 = vadd.f32 %v1535_v11, %v416_v12 }
  0xa5   : > { %v420_v14 = vpack.c.bf16 %v417_v13, %v417_v13 }
  0xa7   : > { %v422_v15 = vunpack.c.l.b16 %v420_v14 }
  0xa9   : > { %v423_v16 = vpack.c.b16 %v422_v15, %v422_v15 }
  0xaa   : > { %v418_v17 = vpop.f32.mrf.mxu0 }
  0xab   : > { %486 = vrot.lane.b32.xlu1 %v423_v16, %s1646_s14  ;;  %424 = vrot.lane.b32.xlu0 %v423_v16, %s1647_s15 }
  0xb3   : > { %488 = vrot.lane.b32.xlu0 %v423_v16, %s1648_s16 }
  0xbb   : > { %461 = vrot.lane.b32.xlu0 %v423_v16, %s2030_s17 }
  0xc3   : > { %523 = vrot.lane.b32.xlu0 %v423_v16, %s2029_s18 }
 0x11d   : > { %v425_v18 = vpop.permute.xlu0 %424  ;;  %v487_v22 = vpop.permute.xlu1 %486 }
 0x11e   : > { %v431_v19 = vsel %vm426_vm2, %v425_v18, 0 }
 0x11f   : > { %440 = vmatpush.bf16.xpose.msra.mxu1 %v431_v19 }
 0x125   : > { %v489_v20 = vpop.permute.xlu0 %488 }
 0x126   : > { %1292 = vmatmul.msk.bf16.vlgmr.msra.gmra.mxu1 %vm426_vm2, %v420_v14  ;;  %v494_v21 = vsel %vm426_vm2, %v489_v20, 0  ;;  %v1652_v14 = vmov 32.0  }
 0x127   : > { %503 = vmatpush.bf16.xpose.msra.mxu3 %v494_v21 }
 0x12d   : > { %v462_v23 = vpop.permute.xlu0 %461 }
 0x12e   : > { %1294 = vmatmul.msk.bf16.vlgmr.msra.gmra.mxu3 %vm426_vm2, %v487_v22  ;;  %v468_v24 = vsel %vm466_vm3, %v462_v23, 0 }
 0x12f   : > { %477 = vmatpush.bf16.msra.mxu2 %v468_v24 }
 0x135   : > { %v524_v25 = vpop.permute.xlu0 %523 }
 0x136   : > { %v529_v26 = vsel %vm466_vm3, %v524_v25, 0  ;;  %v1462_v25 = vld [vmem:[%s2023_s6 + $0x8] sm:$0xff] }
 0x137   : > { %538 = vmatpush.bf16.msrb.mxu2 %v529_v26  ;;  %658 = vmatpush.bf16.msrb.mxu3 %v1462_v25  ;;  %v1461_v26 = vld [vmem:[%s2023_s6] sm:$0xff] }
 0x13b   : > { %659 = vmatpush.bf16.msrb.mxu3 %v1461_v26 }
 0x1a3   : > { %v442_v28 = vpop.f32.mrf.mxu1 }
 0x1a4   : > { %v446_v31 = vmul.f32 0.25, %v442_v28 }
 0x1a6   : > { %v447_v32 = vadd.f32 %v446_v31, %v1801_v30  ;;  %v1469_v31 = vld [vmem:[%s2025_s8 + $0x30] sm:$0xff] }
 0x1a8   : > { %v449_v33 = vsel %vm448_vm5, %v447_v32, -inf }
 0x1a9   : > { %450 = vmax.xlane.f32.xlu1 %v449_v33  ;;  %v1468_v33 = vld [vmem:[%s2025_s8 + $0x28] sm:$0xff] }
 0x1ab   : > { %v444_v34 = vpop.f32.mrf.mxu1 }
 0x1ac   : > { %v1467_v34 = vld [vmem:[%s2025_s8 + $0x20] sm:$0xff] }
 0x1b1   : > { %v505_v35 = vpop.f32.mrf.mxu3 }
 0x1b2   : > { %v509_v36 = vmul.f32 0.25, %v505_v35 }
 0x1b4   : > { %v510_v37 = vadd.f32 %v509_v36, %v1801_v30 }
 0x1b6   : > { %v511_v38 = vsel %vm448_vm5, %v510_v37, -inf }
 0x1b7   : > { %512 = vmax.xlane.f32.xlu2 %v511_v38 }
 0x1b9   : > { %v507_v39 = vpop.f32.mrf.mxu3 }
 0x21c   : > { %v451_v40 = vpop.xlane.xlu1 %450 }
 0x21d   : > { %v452_v41 = vsub.f32 %v447_v32, %v451_v40  ;;  %v1465_v40 = vld [vmem:[%s2025_s8 + $0x10] sm:$0xff] }
 0x21f   : > { %v453_v42 = vmul.f32 1.442695, %v452_v41 }
 0x221   : > { %1540 = vpow2.f32 %v453_v42 }
 0x227   : > { %v1541_v43 = vpop.eup %1540 }
 0x228   : > { %v455_v44 = vsel %vm448_vm5, %v1541_v43, 0.0 }
 0x229   : > { %456 = vadd.xlane.f32.xlu2 %v455_v44 }
 0x22a   : > { %v513_v45 = vpop.xlane.xlu2 %512 }
 0x22b   : > { %v514_v46 = vsub.f32 %v510_v37, %v513_v45  ;;  %v1466_v37 = vld [vmem:[%s2025_s8 + $0x18] sm:$0xff] }
 0x22d   : > { %v515_v47 = vmul.f32 1.442695, %v514_v46  ;;  %v626_v46 = vperm.slane %v1822_v3, 3 }
 0x22f   : > { %1542 = vpow2.f32 %v515_v47 }
 0x235   : > { %v1543_v48 = vpop.eup %1542 }
 0x236   : > { %v517_v49 = vsel %vm448_vm5, %v1543_v48, 0.0 }
 0x237   : > { %518 = vadd.xlane.f32.xlu2 %v517_v49 }
 0x29c   : > { %v457_v50 = vpop.xlane.xlu2 %456 }
 0x29d   : > { %1544 = vrcp.f32 %v457_v50  ;;  %v1464_v50 = vld [vmem:[%s2025_s8 + $0x8] sm:$0xff] }
 0x2a3   : > { %v1545_v51 = vpop.eup %1544 }
 0x2a4   : > { %v459_v52 = vmul.f32 %v1545_v51, %v1541_v43  ;;  %v624_v43 = vperm.slane %v1822_v3, 2  ;;  %v1463_v51 = vld [vmem:[%s2025_s8] sm:$0xff] }
 0x2a6   : > { %v460_v53 = vpack.c.bf16 %v459_v52, %v459_v52  ;;  %v1536_v52 = vld [vmem:[%s2024_s7] ss:$0 sm:$0xff] }
 0x2a8   : > { %1293 = vmatmul.msk.bf16.vlgmr.msra.gmra.mxu2 %vm448_vm5, %v460_v53 }
 0x2a9   : > { %586 = vmatpush.bf16.msra.mxu2 %v1459_v58  ;;  %v683_v58 = vperm.slane %v1822_v3, 1 }
 0x2aa   : > { %v519_v54 = vpop.xlane.xlu2 %518 }
 0x2ab   : > { %1546 = vrcp.f32 %v519_v54 }
 0x2ac   : > { %1548 = vrcp.f32 %v1652_v14 }
 0x2b1   : > { %v1547_v55 = vpop.eup %1546 }
 0x2b2   : > { %v521_v56 = vmul.f32 %v1547_v55, %v1543_v48  ;;  %v1549_v15 = vpop.eup %1548 }
 0x2b3   : > { %v599_v16 = vmul.f32 32.0, %v1549_v15  ;;  %vm603_vm6 = vweird.f32 %v1549_v15 }
 0x2b4   : > { %v522_v57 = vpack.c.bf16 %v521_v56, %v521_v56 }
 0x2b5   : > { %v600_v17 = vsub.f32 1.0, %v599_v16 }
 0x2b7   : > { %v601_v18 = vmul.f32 %v1549_v15, %v600_v17 }
 0x2b8   : > { %1295 = vmatmul.msk.bf16.vlgmr.msrb.gmra.mxu2 %vm448_vm5, %v522_v57 }
 0x2b9   : > { %v602_v19 = vadd.f32 %v1549_v15, %v601_v18  ;;  %732 = vmatpush.bf16.msrb.mxu2 %v1470_v27  ;;  %v1537_v27 = vld [vmem:[%s2020_s3 + $0x1] ss:$0 sm:$0xff] }
 0x2bb   : > { %v1827_v20 = vsel %vm603_vm6, %v1549_v15, %v602_v19  ;;  %v768_v19 = vperm.slane %v1822_v3, 4 }
 0x2bd   : > { %733 = vmatpush.bf16.msrb.mxu2 %v1469_v31 }
 0x2c1   : > { %734 = vmatpush.bf16.msrb.mxu2 %v1468_v33 }
 0x2c5   : > { %735 = vmatpush.bf16.msrb.mxu2 %v1467_v34 }
 0x2c9   : > { %736 = vmatpush.bf16.msrb.mxu2 %v1466_v37 }
 0x2cd   : > { %737 = vmatpush.bf16.msrb.mxu2 %v1465_v40 }
 0x2d1   : > { %738 = vmatpush.bf16.msrb.mxu2 %v1464_v50 }
 0x2d5   : > { %739 = vmatpush.bf16.msrb.mxu2 %v1463_v51 }
 0x32b   : > { %v479_v60 = vpop.f32.mrf.mxu2 }
 0x32c   : > { %v483_v61 = vpack.c.bf16 %v479_v60, %v479_v60 }
 0x32e   : > { %1307 = vmatmul.msk.bf16.vlgmr.msra.gmra.mxu2 %vm426_vm2, %v483_v61 }
 0x333   : > { %v481_v62 = vpop.f32.mrf.mxu2 }
 0x33b   : > { %v540_v63 = vpop.f32.mrf.mxu2 }
 0x33c   : > { %v544_v0 = vpack.c.bf16 %v540_v63, %v540_v63 }
 0x33e   : > { %1302 = vmatmul.msk.bf16.vlgmr.msrb.gmra.mxu0 %vm426_vm2, %v544_v0 }
 0x343   : > { %v542_v1 = vpop.f32.mrf.mxu2 }
 0x3b1   : > { %v588_v2 = vpop.f32.mrf.mxu2 }
 0x3b9   : > { %v590_v4 = vpop.f32.mrf.mxu2 }
 0x3bb   : > { %v566_v7 = vpop.f32.mrf.mxu0 }
 0x3bc   : > { %v589_v8 = vadd.f32 %v588_v2, %v566_v7  ;;  %v1472_v7 = vld [vmem:[%s2019_s2 + $0x18] sm:$0xff] }
 0x3bd   : > { %807 = vmatpush.bf16.msra.mxu0 %v1472_v7 }
 0x3be   : > { %v593_v10 = vadd.f32 %v592_v5, %v589_v8  ;;  %v1471_v8 = vld [vmem:[%s2019_s2 + $0x10] sm:$0xff] }
 0x3c0   : > { %v594_v11 = vadd.f32 %v593_v10, %v1782_v9 }
 0x3c1   : > { %808 = vmatpush.bf16.msra.mxu0 %v1471_v8  ;;  %v1473_v8 = vld [vmem:[%s2021_s4 + $0x10] sm:$0xff] }
 0x3c2   : > { %v595_v12 = vsel %vm403_vm1, %v594_v11, 0.0  ;;  %978 = vmatpush.bf16.msra.mxu2 %v1473_v8 }
 0x3c3   : > { %v568_v13 = vpop.f32.mrf.mxu0  ;;  %596 = vadd.xlane.f32.xlu2 %v595_v12 }
 0x436   : > { %v597_v21 = vpop.xlane.xlu2 %596 }
 0x437   : > { %v605_v22 = vmul.f32 %v1827_v20, %v597_v21 }
 0x439   : > { %v606_v23 = vsub.f32 %v594_v11, %v605_v22  ;;  %v770_v22 = vperm.slane %v1822_v3, 5 }
 0x43b   : > { %v607_v24 = vmul.f32 %v606_v23, %v606_v23 }
 0x43d   : > { %v608_v9 = vsel %vm403_vm1, %v607_v24, 0.0 }
 0x43e   : > { %609 = vadd.xlane.f32.xlu0 %v608_v9 }
 0x4b1   : > { %v610_v28 = vpop.xlane.xlu0 %609 }
 0x4b2   : > { %v611_v29 = vmul.f32 %v610_v28, %v1827_v20 }
 0x4b4   : > { %v612_v32 = vadd.f32 1e-05, %v611_v29 }
 0x4b6   : > { %1550 = vrsqrt.f32 %v612_v32  ;;  %vm619_vm8 = vweird.f32 %v612_v32 }
 0x4bc   : > { %v1551_v35 = vpop.eup %1550 }
 0x4bd   : > { %v614_v36 = vmul.f32 %v1551_v35, %v612_v32  ;;  %vm620_vm7 = vweird.f32 %v1551_v35 }
 0x4be   : > { %vm621_vm9 = vmor %vm619_vm8, %vm620_vm7 }
 0x4bf   : > { %v615_v38 = vmul.f32 %v1551_v35, %v614_v36 }
 0x4c1   : > { %v616_v39 = vmul.f32 0.5, %v615_v38 }
 0x4c3   : > { %v617_v41 = vsub.f32 1.5, %v616_v39 }
 0x4c5   : > { %v618_v42 = vmul.f32 %v1551_v35, %v617_v41 }
 0x4c7   : > { %v622_v44 = vsel %vm621_vm9, %v1551_v35, %v618_v42 }
 0x4c8   : > { %v623_v45 = vmul.f32 %v622_v44, %v606_v23 }
 0x4ca   : > { %v625_v47 = vmul.f32 %v624_v43, %v623_v45 }
 0x4cc   : > { %v627_v48 = vadd.f32 %v626_v46, %v625_v47 }
 0x4ce   : > { %v628_v49 = vpack.c.bf16 %v627_v48, %v627_v48 }
 0x4d0   : > { %1316 = vmatmul.msk.bf16.vlgmr.msrb.gmra.mxu3 %vm403_vm1, %v628_v49 }
 0x553   : > { %v661_v53 = vpop.f32.mrf.mxu3 }
 0x554   : > { %v662_v54 = vadd.f32 %v1536_v52, %v661_v53 }
 0x556   : > { %v665_v55 = vmax.f32 %v662_v54, 0.0 }
 0x558   : > { %v666_v56 = vpack.c.bf16 %v665_v55, %v665_v55 }
 0x55a   : > { %740 = vmatmul.bf16.vlgmr.msrb.gmra.mxu2 %v666_v56 }
 0x55b   : > { %v663_v57 = vpop.f32.mrf.mxu3 }
 0x5dd   : > { %v741_v59 = vpop.f32.mrf.mxu2 }
 0x5de   : > { %v742_v60 = vadd.f32 %v741_v59, %v683_v58 }
 0x5e0   : > { %v745_v61 = vadd.f32 %v742_v60, %v627_v48 }
 0x5e2   : > { %v746_v62 = vsel %vm403_vm1, %v745_v61, 0.0 }
 0x5e3   : > { %747 = vadd.xlane.f32.xlu2 %v746_v62 }
 0x5e5   : > { %v743_v63 = vpop.f32.mrf.mxu2 }
 0x656   : > { %v748_v0 = vpop.xlane.xlu2 %747 }
 0x657   : > { %v749_v1 = vmul.f32 %v748_v0, %v1827_v20 }
 0x659   : > { %v750_v2 = vsub.f32 %v745_v61, %v749_v1 }
 0x65b   : > { %v751_v4 = vmul.f32 %v750_v2, %v750_v2 }
 0x65d   : > { %v752_v5 = vsel %vm403_vm1, %v751_v4, 0.0 }
 0x65e   : > { %753 = vadd.xlane.f32.xlu2 %v752_v5 }
 0x6d1   : > { %v754_v10 = vpop.xlane.xlu2 %753 }
 0x6d2   : > { %v755_v11 = vmul.f32 %v754_v10, %v1827_v20  ;;  %v1474_v10 = vld [vmem:[%s2021_s4 + $0x18] sm:$0xff] }
 0x6d4   : > { %v756_v12 = vadd.f32 1e-05, %v755_v11 }
 0x6d6   : > { %1552 = vrsqrt.f32 %v756_v12  ;;  %vm763_vm11 = vweird.f32 %v756_v12 }
 0x6dc   : > { %v1553_v13 = vpop.eup %1552 }
 0x6dd   : > { %v758_v14 = vmul.f32 %v1553_v13, %v756_v12  ;;  %vm764_vm10 = vweird.f32 %v1553_v13 }
 0x6de   : > { %vm765_vm12 = vmor %vm763_vm11, %vm764_vm10 }
 0x6df   : > { %v759_v15 = vmul.f32 %v1553_v13, %v758_v14 }
 0x6e1   : > { %v760_v16 = vmul.f32 0.5, %v759_v15 }
 0x6e3   : > { %v761_v17 = vsub.f32 1.5, %v760_v16 }
 0x6e5   : > { %v762_v18 = vmul.f32 %v1553_v13, %v761_v17 }
 0x6e7   : > { %v766_v21 = vsel %vm765_vm12, %v1553_v13, %v762_v18 }
 0x6e8   : > { %v767_v23 = vmul.f32 %v766_v21, %v750_v2 }
 0x6ea   : > { %v769_v24 = vmul.f32 %v768_v19, %v767_v23  ;;  %v1920_v19 = vld [vmem:[%s2022_s5 + $0x8] sm:$0xff] }
 0x6eb   : > { %v984_v21 = vperm.slane %v1920_v19, 0 }
 0x6ec   : > { %v771_v9 = vadd.f32 %v770_v22, %v769_v24 }
 0x6ee   : > { %v1882_v25 = vmul.f32 %v1779_v6, %v771_v9 }
 0x6f0   : > { %v775_v26 = vpack.c.bf16 %v1882_v25, %v1882_v25 }
 0x6f2   : > { %1363 = vmatmul.msk.bf16.vlgmr.msra.gmra.mxu0 %vm403_vm1, %v775_v26 }
 0x76f   : > { %v810_v28 = vpop.f32.mrf.mxu0 }
 0x770   : > { %v811_v29 = vadd.f32 %v1537_v27, %v810_v28 }
 0x772   : > { %v814_v31 = vpack.c.bf16 %v811_v29, %v811_v29 }
 0x774   : > { %v816_v32 = vunpack.c.l.b16 %v814_v31 }
 0x776   : > { %v817_v3 = vpack.c.b16 %v816_v32, %v816_v32 }
 0x777   : > { %v812_v33 = vpop.f32.mrf.mxu0 }
 0x778   : > { %880 = vrot.lane.b32.xlu1 %v817_v3, %s1648_s16  ;;  %818 = vrot.lane.b32.xlu2 %v817_v3, %s1647_s15  ;;  %s2036_s15 = smov 48   ;;  %v1476_v33 = vld [vmem:[%s2023_s6 + $0x18] sm:$0xff] }
 0x780   : > { %878 = vrot.lane.b32.xlu2 %v817_v3, %s1646_s14  ;;  %s2035_s14 = smov 64  }
 0x7d2   : > { %v819_v34 = vpop.permute.xlu2 %818 }
 0x7d3   : > { %v824_v35 = vsel %vm426_vm2, %v819_v34, 0  ;;  %v1484_v34 = vld [vmem:[%s2025_s8 + $0x78] sm:$0xff] }
 0x7d4   : > { %833 = vmatpush.bf16.xpose.msrb.mxu1 %v824_v35 }
 0x7da   : > { %v879_v38 = vpop.permute.xlu2 %878 }
 0x7db   : > { %1364 = vmatmul.msk.bf16.vlgmr.msrb.gmra.mxu1 %vm426_vm2, %v814_v31 }
 0x7ea   : > { %v881_v36 = vpop.permute.xlu1 %880 }
 0x7eb   : > { %v886_v37 = vsel %vm426_vm2, %v881_v36, 0 }
 0x7ec   : > { %895 = vmatpush.bf16.xpose.msrb.mxu0 %v886_v37  ;;  %v1483_v37 = vld [vmem:[%s2025_s8 + $0x70] sm:$0xff] }
 0x7f3   : > { %1368 = vmatmul.msk.bf16.vlgmr.msrb.gmra.mxu0 %vm426_vm2, %v879_v38 }
 0x7f4   : > { %1045 = vmatpush.bf16.msra.mxu0 %v1476_v33 }
 0x858   : > { %v835_v39 = vpop.f32.mrf.mxu1 }
 0x859   : > { %v839_v40 = vmul.f32 0.25, %v835_v39  ;;  %v1482_v39 = vld [vmem:[%s2025_s8 + $0x68] sm:$0xff] }
 0x85b   : > { %v840_v41 = vadd.f32 %v839_v40, %v1801_v30  ;;  %v1481_v40 = vld [vmem:[%s2025_s8 + $0x60] sm:$0xff] }
 0x85d   : > { %v841_v42 = vsel %vm448_vm5, %v840_v41, -inf }
 0x85e   : > { %842 = vmax.xlane.f32.xlu0 %v841_v42 }
 0x860   : > { %v837_v43 = vpop.f32.mrf.mxu1 }
 0x861   : > { %v1480_v43 = vld [vmem:[%s2025_s8 + $0x58] sm:$0xff] }
 0x870   : > { %v897_v44 = vpop.f32.mrf.mxu0 }
 0x871   : > { %v901_v45 = vmul.f32 0.25, %v897_v44 }
 0x872   : > { %853 = vrot.lane.b32.xlu0 %v817_v3, %s2035_s14  ;;  %s1216_s14 = sshll.u32 %s1212_s20, 4  ;;  %s1217_s14 = int_to_ptr.hbm [resolvable:$true] %s1216_s14 }
 0x873   : > { %v902_v46 = vadd.f32 %v901_v45, %v1801_v30  ;;  %s1592_s1 = sshra.s32 %s1217_s14, 4  ;;  %s1593_s1 = int_to_ptr.hbm [resolvable:$true] %s1592_s1 }
 0x874   : > { %s1594_s13 = scalar_lea.hbm %s1593_s1, 8  ;;  %p1599_p0 = scmp.lt.s32.totalorder %s1593_s1, %s2028_s11 }
 0x875   : > { %v903_v47 = vsel %vm448_vm5, %v902_v46, -inf  ;;  %p1595_p11 = scmp.ne.s32.totalorder %s1593_s1, %s1594_s13 }
 0x876   : > { %904 = vmax.xlane.f32.xlu1 %v903_v47 }
 0x877   : > { %p1596_p12 = pnand %p1595_p11, %p1754_p5 }
 0x878   : > { %v899_v48 = vpop.f32.mrf.mxu0 }
 0x879   : > { %p1597_p13 = pneg %p1596_p12 }
 0x8d1   : > { %v843_v49 = vpop.xlane.xlu0 %842 }
 0x8d2   : > { %v844_v50 = vsub.f32 %v840_v41, %v843_v49  ;;  %v1009_v49 = vperm.slane %v1920_v19, 2 }
 0x8d4   : > { %v845_v51 = vmul.f32 1.442695, %v844_v50 }
 0x8d6   : > { %1554 = vpow2.f32 %v845_v51  ;;  %v1011_v51 = vperm.slane %v1920_v19, 3 }
 0x8dc   : > { %v1555_v52 = vpop.eup %1554 }
 0x8dd   : > { %v847_v53 = vsel %vm448_vm5, %v1555_v52, 0.0 }
 0x8de   : > { %848 = vadd.xlane.f32.xlu2 %v847_v53 }
 0x8e4   : > { %v854_v54 = vpop.permute.xlu0 %853 }
 0x8e5   : > { %v859_v55 = vsel %vm466_vm3, %v854_v54, 0 }
 0x8e6   : > { %868 = vmatpush.bf16.msra.mxu3 %v859_v55 }
 0x8e9   : > { %v905_v56 = vpop.xlane.xlu1 %904 }
 0x8ea   : > { %v906_v57 = vsub.f32 %v902_v46, %v905_v56  ;;  %956 = vmatpush.bf16.msrb.mxu3 %v1474_v10  ;;  %v1479_v46 = vld [vmem:[%s2025_s8 + $0x50] sm:$0xff]  ;;  %v1478_v56 = vld [vmem:[%s2025_s8 + $0x48] sm:$0xff] }
 0x8ec   : > { %v907_v58 = vmul.f32 1.442695, %v906_v57  ;;  %v1477_v57 = vld [vmem:[%s2025_s8 + $0x40] sm:$0xff] }
 0x8ee   : > { %1556 = vpow2.f32 %v907_v58  ;;  %v1538_v58 = vld [vmem:[%s2024_s7 + $0x1] ss:$0 sm:$0xff] }
 0x8f4   : > { %v1557_v30 = vpop.eup %1556 }
 0x8f5   : > { %v909_v59 = vsel %vm448_vm5, %v1557_v30, 0.0 }
 0x8f6   : > { %910 = vadd.xlane.f32.xlu0 %v909_v59 }
 0x90a   : > { %915 = vrot.lane.b32.xlu0 %v817_v3, %s2036_s15  ;;  %s357_s15 = sand.u32 1, %s1634_s22  }
 0x90b   : > { %s1280_s16 = sshll.u32 %s357_s15, 3  ;;  %s1202_s0 = scalar_lea.sflag [#allocation5], %s357_s15 }
 0x90c   : > { %s359_s25 = scalar_lea.vmem [#allocation4], %s1280_s16  ;;  %s1598_s16 = scalar_lea.hbm %s2028_s11, 16 }
 0x90d   : > { %s1214_s27 = sshll.u32 %s359_s25, 4  ;;  %p1600_p1 = scmp.lt.s32.totalorder %s1598_s16, %s1594_s13  ;;  %s1215_s27 = int_to_ptr.vmem [resolvable:$true] %s1214_s27 }
 0x90f   : > { %p1601_p2 = por %p1600_p1, %p1599_p0 }
 0x911   : > { %p1602_p3 = pnand %p1601_p2, %p1597_p13 }
 0x951   : > { %v849_v60 = vpop.xlane.xlu2 %848 }
 0x952   : > { %1558 = vrcp.f32 %v849_v60 }
 0x958   : > { %v1559_v61 = vpop.eup %1558 }
 0x959   : > { %v851_v62 = vmul.f32 %v1559_v61, %v1555_v52 }
 0x95b   : > { %v852_v63 = vpack.c.bf16 %v851_v62, %v851_v62 }
 0x95d   : > { %1365 = vmatmul.msk.bf16.vlgmr.msra.gmra.mxu3 %vm448_vm5, %v852_v63  ;;  %v1071_v63 = vperm.slane %v1920_v19, 1 }
 0x969   : > { %v911_v0 = vpop.xlane.xlu0 %910 }
 0x96a   : > { %1560 = vrcp.f32 %v911_v0 }
 0x970   : > { %v1561_v1 = vpop.eup %1560 }
 0x971   : > { %v913_v2 = vmul.f32 %v1561_v1, %v1557_v30 }
 0x973   : > { %v914_v7 = vpack.c.bf16 %v913_v2, %v913_v2 }
 0x97c   : > { %v916_v4 = vpop.permute.xlu0 %915 }
 0x97d   : > { %v921_v5 = vsel %vm466_vm3, %v916_v4, 0 }
 0x97e   : > { %930 = vmatpush.bf16.msra.mxu1 %v921_v5 }
 0x981   : > { %1369 = vmatmul.msk.bf16.vlgmr.msra.gmra.mxu1 %vm448_vm5, %v914_v7 }
 0x982   : > { %1120 = vmatpush.bf16.msrb.mxu1 %v1484_v34 }
 0x986   : > { %1121 = vmatpush.bf16.msrb.mxu1 %v1483_v37 }
 0x98a   : > { %1122 = vmatpush.bf16.msrb.mxu1 %v1482_v39 }
 0x98e   : > { %1123 = vmatpush.bf16.msrb.mxu1 %v1481_v40 }
 0x992   : > { %1124 = vmatpush.bf16.msrb.mxu1 %v1480_v43 }
 0x996   : > { %1125 = vmatpush.bf16.msrb.mxu1 %v1479_v46 }
 0x99a   : > { %1126 = vmatpush.bf16.msrb.mxu1 %v1478_v56 }
 0x99e   : > { %1127 = vmatpush.bf16.msrb.mxu1 %v1477_v57 }
 0x9e0   : > { %v870_v11 = vpop.f32.mrf.mxu3 }
 0x9e1   : > { %v874_v12 = vpack.c.bf16 %v870_v11, %v870_v11 }
 0x9e3   : > { %1381 = vmatmul.msk.bf16.vlgmr.msra.gmra.mxu2 %vm426_vm2, %v874_v12 }
 0x9e8   : > { %v872_v13 = vpop.f32.mrf.mxu3 }
 0x9e9   : > { %v1486_v13 = vld [vmem:[%s2026_s9 + $0x8] sm:$0xff] }
 0x9ea   : > { %1192 = vmatpush.bf16.msra.mxu3 %v1486_v13 }
 0x9fe   : > { %v932_v14 = vpop.f32.mrf.mxu1 }
 0x9ff   : > { %v936_v15 = vpack.c.bf16 %v932_v14, %v932_v14  ;;  %v1485_v14 = vld [vmem:[%s2026_s9] sm:$0xff] }
 0xa00   : > { %1193 = vmatpush.bf16.msra.mxu3 %v1485_v14 }
 0xa01   : > { %1376 = vmatmul.msk.bf16.vlgmr.msrb.gmra.mxu3 %vm426_vm2, %v936_v15 }
 0xa06   : > { %v934_v16 = vpop.f32.mrf.mxu1 }
 0xa66   : > { %v980_v17 = vpop.f32.mrf.mxu2 }
 0xa6e   : > { %v982_v18 = vpop.f32.mrf.mxu2 }
 0xa84   : > { %v958_v22 = vpop.f32.mrf.mxu3 }
 0xa85   : > { %v981_v23 = vadd.f32 %v980_v17, %v958_v22 }
 0xa87   : > { %v985_v24 = vadd.f32 %v984_v21, %v981_v23 }
 0xa89   : > { %v986_v9 = vadd.f32 %v985_v24, %v1882_v25  ;;  %v1475_v25 = vld [vmem:[%s2023_s6 + $0x10] sm:$0xff] }
 0xa8a   : > { %1046 = vmatpush.bf16.msra.mxu0 %v1475_v25  ;;  %v1539_v25 = vld [vmem:[%s2027_s10] ss:$0 sm:$0xff] }
 0xa8b   : > { %v987_v26 = vsel %vm403_vm1, %v986_v9, 0.0 }
 0xa8c   : > { %988 = vadd.xlane.f32.xlu1 %v987_v26  ;;  %v960_v27 = vpop.f32.mrf.mxu3  ;;  %v1156_v26 = vperm.slane %v1920_v19, 4 }
 0xaff   : > { %v989_v28 = vpop.xlane.xlu1 %988 }
 0xb00   : > { %v990_v29 = vmul.f32 %v989_v28, %v1827_v20  ;;  %v1158_v28 = vperm.slane %v1920_v19, 5 }
 0xb02   : > { %v991_v31 = vsub.f32 %v986_v9, %v990_v29 }
 0xb04   : > { %v992_v32 = vmul.f32 %v991_v31, %v991_v31 }
 0xb06   : > { %v993_v3 = vsel %vm403_vm1, %v992_v32, 0.0 }
 0xb07   : > { %994 = vadd.xlane.f32.xlu0 %v993_v3 }
 0xb7a   : > { %v995_v35 = vpop.xlane.xlu0 %994 }
 0xb7b   : > { %v996_v36 = vmul.f32 %v995_v35, %v1827_v20 }
 0xb7d   : > { %v997_v38 = vadd.f32 1e-05, %v996_v36 }
 0xb7f   : > { %1562 = vrsqrt.f32 %v997_v38  ;;  %vm1004_vm14 = vweird.f32 %v997_v38 }
 0xb85   : > { %v1563_v41 = vpop.eup %1562 }
 0xb86   : > { %v999_v42 = vmul.f32 %v1563_v41, %v997_v38  ;;  %vm1005_vm13 = vweird.f32 %v1563_v41 }
 0xb87   : > { %vm1006_vm15 = vmor %vm1004_vm14, %vm1005_vm13 }
 0xb88   : > { %v1000_v44 = vmul.f32 %v1563_v41, %v999_v42 }
 0xb8a   : > { %v1001_v45 = vmul.f32 0.5, %v1000_v44 }
 0xb8c   : > { %v1002_v47 = vsub.f32 1.5, %v1001_v45 }
 0xb8e   : > { %v1003_v48 = vmul.f32 %v1563_v41, %v1002_v47 }
 0xb90   : > { %v1007_v50 = vsel %vm1006_vm15, %v1563_v41, %v1003_v48 }
 0xb91   : > { %v1008_v52 = vmul.f32 %v1007_v50, %v991_v31 }
 0xb93   : > { %v1010_v53 = vmul.f32 %v1009_v49, %v1008_v52 }
 0xb95   : > { %v1012_v54 = vadd.f32 %v1011_v51, %v1010_v53 }
 0xb97   : > { %v1013_v55 = vpack.c.bf16 %v1012_v54, %v1012_v54 }
 0xb99   : > { %1395 = vmatmul.msk.bf16.vlgmr.msra.gmra.mxu0 %vm403_vm1, %v1013_v55 }
 0xc16   : > { %v1048_v30 = vpop.f32.mrf.mxu0 }
 0xc17   : > { %v1049_v59 = vadd.f32 %v1538_v58, %v1048_v30 }
 0xc19   : > { %v1052_v60 = vmax.f32 %v1049_v59, 0.0 }
 0xc1b   : > { %v1053_v61 = vpack.c.bf16 %v1052_v60, %v1052_v60 }
 0xc1d   : > { %1128 = vmatmul.bf16.vlgmr.msrb.gmra.mxu1 %v1053_v61 }
 0xc1e   : > { %v1050_v62 = vpop.f32.mrf.mxu0 }
 0xc9a   : > { %v1129_v0 = vpop.f32.mrf.mxu1 }
 0xc9b   : > { %v1130_v1 = vadd.f32 %v1129_v0, %v1071_v63 }
 0xc9d   : > { %v1133_v2 = vadd.f32 %v1130_v1, %v1012_v54 }
 0xc9f   : > { %v1134_v4 = vsel %vm403_vm1, %v1133_v2, 0.0 }
 0xca0   : > { %1135 = vadd.xlane.f32.xlu2 %v1134_v4 }
 0xca2   : > { %v1131_v5 = vpop.f32.mrf.mxu1 }
 0xd13   : > { %v1136_v7 = vpop.xlane.xlu2 %1135 }
 0xd14   : > { %v1137_v8 = vmul.f32 %v1136_v7, %v1827_v20 }
 0xd16   : > { %v1138_v10 = vsub.f32 %v1133_v2, %v1137_v8 }
 0xd18   : > { %v1139_v11 = vmul.f32 %v1138_v10, %v1138_v10 }
 0xd1a   : > { %v1140_v12 = vsel %vm403_vm1, %v1139_v11, 0.0 }
 0xd1b   : > { %1141 = vadd.xlane.f32.xlu1 %v1140_v12 }
 0xd8e   : > { %v1142_v15 = vpop.xlane.xlu1 %1141 }
 0xd8f   : > { %v1143_v16 = vmul.f32 %v1142_v15, %v1827_v20 }
 0xd91   : > { %v1144_v17 = vadd.f32 1e-05, %v1143_v16 }
 0xd93   : > { %1564 = vrsqrt.f32 %v1144_v17  ;;  %vm1151_vm2 = vweird.f32 %v1144_v17 }
 0xd99   : > { %v1565_v18 = vpop.eup %1564 }
 0xd9a   : > { %v1146_v21 = vmul.f32 %v1565_v18, %v1144_v17  ;;  %vm1152_vm0 = vweird.f32 %v1565_v18 }
 0xd9b   : > { %vm1153_vm3 = vmor %vm1151_vm2, %vm1152_vm0 }
 0xd9c   : > { %v1147_v22 = vmul.f32 %v1565_v18, %v1146_v21 }
 0xd9e   : > { %v1148_v23 = vmul.f32 0.5, %v1147_v22 }
 0xda0   : > { %v1149_v24 = vsub.f32 1.5, %v1148_v23 }
 0xda2   : > { %v1150_v9 = vmul.f32 %v1565_v18, %v1149_v24 }
 0xda4   : > { %v1154_v27 = vsel %vm1153_vm3, %v1565_v18, %v1150_v9 }
 0xda5   : > { %v1155_v29 = vmul.f32 %v1154_v27, %v1138_v10 }
 0xda7   : > { %v1157_v20 = vmul.f32 %v1156_v26, %v1155_v29 }
 0xda9   : > { %v1159_v31 = vadd.f32 %v1158_v28, %v1157_v20 }
 0xdab   : > { %v1160_v32 = vmul.f32 %v1779_v6, %v1159_v31 }
 0xdad   : > { %v1161_v3 = vmul.f32 %v1779_v6, %v1160_v32 }
 0xdaf   : > { %v1162_v33 = vpack.c.bf16 %v1161_v3, %v1161_v3 }
 0xdb1   : > { %1452 = vmatmul.msk.bf16.vlgmr.msra.gmra.mxu3 %vm403_vm1, %v1162_v33 }
 0xe34   : > { %v1195_v19 = vpop.f32.mrf.mxu3 }
 0xe35   : > { %v1196_v34 = vadd.f32 %v1539_v25, %v1195_v19 }
 0xe37   : > { %v1199_v35 = vmul.f32 %v1779_v6, %v1196_v34 }
 0xe39   : > { %1200 = vst.msk [vmem:[%s359_s25] sm:$0xff] %vm403_vm1, %v1199_v35 }
 0xe3a   : > { %1605 = shalt.err (!%p1602_p3)
}
 0xe3b   : > { %1487 = dma.vmem_to_hbm [thread:$0]  (%p1754_p5), %s1215_s27, 128, %s1217_s14, %s1202_s0  }
 0xe3c   : > { %v1197_v6 = vpop.f32.mrf.mxu3 }
 0xe3d PF: > { %p1493_p4 = scmp.ge.s32.totalorder %s1642_s24, 2  ;;  %s1228_s15 = sand.u32 1, %s1630_s21  }
 0xe3e   : > { %s1229_s20 = scalar_lea.sflag [#allocation5], %s1228_s15 }
 0xe3f   : > { %p1490_p7 = pnand %p1493_p4, %p1758_p6 }
 0xe41   : > { %p1491_p8 = pneg %p1490_p7 }
 0xe43   : > { %1625 = dma.done.wait (%p1491_p8), %s1229_s20, 128  }
 0xe44   : > { %1627 = vsyncadd (%p1491_p8), %s1229_s20, 4294967168  ;;  %p29_p9 = scmp.ge.s32.totalorder %s1741_s26, 4   ;;  %s2037_s21 = smov %s1634_s22 }
 0xe45   : > { %s2038_s22 = smov %s1638_s23  ;;  %s2039_s23 = smov %s1752_s29 }
 0xe46   : > { %s2040_s24 = smov %s1741_s26  ;;  %31 = sbr.rel (!%p29_p9) target bundleno = 9 (0x9), region = 104 }
 0xe4b   :  { %1235 = vsyncpa [#allocation5], 1 }
 0xe4c   :  { %1237 = vsyncpa [#allocation5 + $0x1], 1 }

</bundles_post_ra>
